<compile_context>
chip_gen: v5e
topology: v5e:2x2
jax: 0.10.0
libtpu: 0.0.40
codegen_flags: <defaults>
</compile_context>

<pallas_src>
import functools

import jax
import jax.numpy as jnp
from jax import lax
from jax.experimental import pallas as pl
from jax.experimental.pallas import tpu as pltpu


_UNROLL_T_MAX = 16    # fully unroll the time loop only for short sequences ...
_UNROLL_BT_MAX = 64   # ... and small batch tiles (bounds code size / vreg pressure)


# ----------------------------------------------------------------------------
# Pallas kernel: fused 2-layer LSTM recurrence (one matmul / step) + mean + MLP head
# ----------------------------------------------------------------------------
def lstm_head_kernel(x_ref, lens_ref,
                     wblk_ref, b0_ref, b1_ref,
                     w1a_ref, w1b_ref, bfc1_ref,
                     w2_ref, bfc2_ref,
                     w3_ref, bfc3_ref,
                     out_ref, lhs_ref):
    Tp1, BT, D = x_ref.shape
    T = Tp1 - 1                       # x carries one trailing zero timestep
    G = b0_ref.shape[-1]              # 4H
    H = G // 4
    H4 = w2_ref.shape[-1]
    PADW = out_ref.shape[-1]
    f32 = jnp.float32
    bf16 = jnp.bfloat16

    # Hoist all weight/bias loads out of the loop.
    wblk = wblk_ref[...]              # (2H+D, 8H) bf16 block weight
    b0 = b0_ref[...]                  # (1, 4H) f32
    b1 = b1_ref[...]                  # (1, 4H) f32

    def gates_to_hc(gates, c):
        # Gate lane order [i, f, o | g]: ONE contiguous sigmoid over 3H lanes and
        # ONE tanh over H lanes (instead of full-width sigmoid AND tanh over 4H).
        sg = jax.nn.sigmoid(gates[:, :3 * H])
        g_g = jnp.tanh(gates[:, 3 * H:])
        i_g = sg[:, 0:H]
        f_g = sg[:, H:2 * H]
        o_g = sg[:, 2 * H:3 * H]
        c_new = f_g * c + i_g * g_g
        h_new = o_g * jnp.tanh(c_new)
        return h_new, c_new

    # Prime: layer-0 pre-activation gates for t=0 (h0_{-1} == 0 -> input part only).
    # wblk rows [2H:2H+D, 0:4H] hold wih0.T.
    g0 = jnp.dot(x_ref[0], wblk[2 * H:, :G], preferred_element_type=f32) + b0

    def step(t, carry):
        c0, h1, c1, g0, acc = carry
        # Layer-0 cell at step t (gates were produced by the previous fused matmul).
        h0, c0 = gates_to_hc(g0, c0)
        # Stage the fused-matmul LHS [h0_t | h1_{t-1} | x_{t+1}] into the persistent
        # bf16 VMEM slab (fixed lane windows; stores overlap the previous MXU drain).
        lhs_ref[:, 0:H] = h0.astype(bf16)
        lhs_ref[:, H:2 * H] = h1.astype(bf16)
        lhs_ref[:, 2 * H:] = x_ref[t + 1]
        # ONE dependent matmul per step:
        #   cols [0:4H]  -> layer-0 gates for step t+1 (x_{t+1}@wih0.T + h0_t@whh0.T)
        #   cols [4H:8H] -> layer-1 gates for step t   (h0_t@wih1.T + h1_{t-1}@whh1.T)
        gg = jnp.dot(lhs_ref[...], wblk, preferred_element_type=f32)
        g1 = gg[:, G:] + b1
        h1, c1 = gates_to_hc(g1, c1)
        return (c0, h1, c1, gg[:, :G] + b0, acc + h1)

    zeros = jnp.zeros((BT, H), f32)
    carry = (zeros, zeros, zeros, g0, zeros)
    unrolled = (T <= _UNROLL_T_MAX) and (BT <= _UNROLL_BT_MAX)   # static
    if unrolled:
        for t in range(T):
            carry = step(t, carry)
    else:
        carry = lax.fori_loop(0, T, step, carry,
                              unroll=8 if BT <= _UNROLL_BT_MAX else 4)
    h_mean = carry[4] * (1.0 / float(T))                         # mean over time

    # ---- MLP head.
    # fc1 on cat([h_mean, lens], 1) as a split matmul (avoids odd-lane concat):
    #   fc1(cat) = h_mean @ W1[:, :H].T + lens * W1[:, H].T + b1
    lens = lens_ref[...]                                         # (BT, 1) f32
    z1 = (jnp.dot(h_mean.astype(bf16), w1a_ref[...], preferred_element_type=f32)
          + lens * w1b_ref[...] + bfc1_ref[...])
    a1 = jnp.where(z1 > 0, z1, 0.1 * z1)                         # LeakyReLU(0.1)
    z2 = jnp.dot(a1.astype(bf16), w2_ref[...], preferred_element_type=f32) + bfc2_ref[...]
    out1 = jnp.where(z2 > 0, z2, 0.1 * z2)                       # LeakyReLU(0.1)
    z3 = jnp.dot(out1.astype(bf16), w3_ref[...], preferred_element_type=f32) + bfc3_ref[...]

    # ---- ONE full-width lane-dense store: cols [:H4]=out1, [H4]=out2, rest zero.
    parts = [out1, z3]
    if PADW > H4 + 1:
        parts.append(jnp.zeros((BT, PADW - H4 - 1), f32))
    out_ref[...] = jnp.concatenate(parts, axis=-1)


# ----------------------------------------------------------------------------
# Wrapper (glue: slicing / padding / weight reorder + block stacking)
# ----------------------------------------------------------------------------
def _round_up(n, m):
    return ((n + m - 1) // m) * m


@functools.partial(jax.jit, static_argnames=("auxi_len",))
def lstmnet_forward(x, params, auxi_len=5):
    # x: (B, T_total, input_dim) float32, batch-first like PyTorch.
    x = x.astype(jnp.float32)
    B = x.shape[0]
    lens = x[:, -1, 0:1]                                   # (B, 1)
    x_seq = x[:, :-1, :]                                   # (B, T, D)
    T, D = x_seq.shape[1], x_seq.shape[2]
    H = params["whh0"].shape[1]                            # hidden_dim
    G = 4 * H
    H4 = params["w_fc2"].shape[0]                          # output_dim // 4
    # fc1 consumes cat([h_mean(H), lens(1)]); the split matmul below assumes this.
    assert params["w_fc1"].shape[1] == H + 1, "fc1 in_features must be hidden_dim + 1"

    # ---- Batch tiling: pad to sublane granularity; >= 2 tiles once B_pad >= 16
    # (so v7x's 2 TensorCores both get work); tiles capped at 128 rows (v5e MXU).
    B_pad0 = max(8, _round_up(B, 8))
    if B_pad0 <= 8:
        BT = B_pad0
    else:
        BT = min(128, _round_up((B_pad0 + 1) // 2, 8))
    B_pad = _round_up(B_pad0, BT)
    nb = B_pad // BT
    pad_b = B_pad - B
    if pad_b:
        x_seq = jnp.pad(x_seq, ((0, pad_b), (0, 0), (0, 0)))
        lens = jnp.pad(lens, ((0, pad_b), (0, 0)))

    bf16 = jnp.bfloat16
    # Time-major bf16 MXU operand with ONE trailing zero timestep so the fused step
    # can always read x_{t+1} (the layer-0 gates it yields at t = T-1 are discarded).
    x_tm = jnp.transpose(x_seq.astype(bf16), (1, 0, 2))            # (T, B_pad, D)
    x_tm = jnp.concatenate([x_tm, jnp.zeros((1, B_pad, D), bf16)], axis=0)

    # ---- Gate reorder [i, f, g, o] -> [i, f, o, g], applied consistently to all LSTM
    # weight rows AND the fused biases (matches the slices in gates_to_hc).
    def reorder(w):
        return jnp.concatenate([w[:2 * H], w[3 * H:], w[2 * H:3 * H]], axis=0)

    W0 = reorder(params["wih0"]).T                                  # (D, 4H)
    U0 = reorder(params["whh0"]).T                                  # (H, 4H)
    W1 = reorder(params["wih1"]).T                                  # (H, 4H)
    U1 = reorder(params["whh1"]).T                                  # (H, 4H)
    # Block weight for the single fused per-step matmul:
    #   LHS  = [h0_t (H) | h1_{t-1} (H) | x_{t+1} (D)]
    #   cols [0:4H]  (layer-0 gates, step t+1) -> rows [whh0.T ; 0      ; wih0.T]
    #   cols [4H:8H] (layer-1 gates, step t)   -> rows [wih1.T ; whh1.T ; 0     ]
    w_blk = jnp.concatenate([
        jnp.concatenate([U0, W1], axis=1),
        jnp.concatenate([jnp.zeros((H, G), jnp.float32), U1], axis=1),
        jnp.concatenate([W0, jnp.zeros((D, G), jnp.float32)], axis=1),
    ], axis=0).astype(bf16)                                         # (2H+D, 8H)
    b0 = reorder(params["bih0"] + params["bhh0"]).reshape(1, -1)    # (1, 4H) f32
    b1 = reorder(params["bih1"] + params["bhh1"]).reshape(1, -1)    # (1, 4H) f32

    w1a_T = params["w_fc1"][:, :H].T.astype(bf16)                   # (H, H2)
    w1b = params["w_fc1"][:, H:].T                                  # (1, H2) f32 ("lens" col)
    bfc1 = params["b_fc1"].reshape(1, -1)
    w2_T = params["w_fc2"].T.astype(bf16)                           # (H2, H4)
    bfc2 = params["b_fc2"].reshape(1, -1)
    w3_T = params["w_fc3"].T.astype(bf16)                           # (H4, 1)
    bfc3 = params["b_fc3"].reshape(1, -1)

    PADW = max(128, _round_up(H4 + 1, 128))                         # lane-dense out width

    # ---- VMEM budget derived from actual buffer sizes (double-buffered I/O blocks,
    # resident weights, LHS staging scratch) + headroom, capped under v7x's 64 MiB.
    lhsw = 2 * H + D
    weights_bytes = (w_blk.size * 2 + (b0.size + b1.size) * 4
                     + w1a_T.size * 2 + (w1b.size + bfc1.size) * 4
                     + w2_T.size * 2 + bfc2.size * 4
                     + w3_T.size * 2 + bfc3.size * 4)
    io_bytes = 2 * ((T + 1) * BT * D * 2 + BT * 4 + BT * PADW * 4)
    scratch_bytes = BT * _round_up(lhsw, 128) * 2
    vmem_limit = int(min(max(6 * (io_bytes + 2 * weights_bytes + scratch_bytes),
                             16 << 20), 64 << 20))

    def full(a):
        return pl.BlockSpec(a.shape, lambda i, _nd=a.ndim: (0,) * _nd)

    grid_spec = pltpu.PrefetchScalarGridSpec(
        num_scalar_prefetch=0,
        grid=(nb,),
        in_specs=[
            pl.BlockSpec((T + 1, BT, D), lambda i: (0, i, 0)),  # x (time-major, tiled)
            pl.BlockSpec((BT, 1), lambda i: (i, 0)),            # lens
            full(w_blk), full(b0), full(b1),
            full(w1a_T), full(w1b), full(bfc1),
            full(w2_T), full(bfc2),
            full(w3_T), full(bfc3),
        ],
        out_specs=pl.BlockSpec((BT, PADW), lambda i: (i, 0)),
        scratch_shapes=[pltpu.VMEM((BT, lhsw), bf16)],           # fused-matmul LHS slab
    )

    slab = pl.pallas_call(
        lstm_head_kernel,
        out_shape=jax.ShapeDtypeStruct((B_pad, PADW), jnp.float32),
        grid_spec=grid_spec,
        compiler_params=pltpu.CompilerParams(
            dimension_semantics=("parallel",),   # batch tiles independent -> megacore
            vmem_limit_bytes=vmem_limit,
        ),
    )(x_tm, lens,
      w_blk, b0, b1,
      w1a_T, w1b, bfc1,
      w2_T, bfc2,
      w3_T, bfc3)

    out1 = slab[:B, :H4]
    out2 = slab[:B, H4:H4 + 1]
    return out2, out1


# ----------------------------------------------------------------------------
# Pure-JAX reference (mirrors the PyTorch forward) for correctness checking
# ----------------------------------------------------------------------------
def reference_forward(x, params, auxi_len=5):
    x = x.astype(jnp.float32)
    lens = x[:, -1, 0:1]
    xs = x[:, :-1, :]
    B, T, _ = xs.shape
    H = params["whh0"].shape[1]

    def cell(x_t, h, c, wih, whh, bih, bhh):
        g = x_t @ wih.T + h @ whh.T + bih + bhh
        i = jax.nn.sigmoid(g[:, 0 * H:1 * H])
        f = jax.nn.sigmoid(g[:, 1 * H:2 * H])
        gg = jnp.tanh(g[:, 2 * H:3 * H])
        o = jax.nn.sigmoid(g[:, 3 * H:4 * H])
        c = f * c + i * gg
        h = o * jnp.tanh(c)
        return h, c

    h0 = c0 = h1 = c1 = jnp.zeros((B, H), jnp.float32)
    outs = []
    for t in range(T):
        h0, c0 = cell(xs[:, t, :], h0, c0, params["wih0"], params["whh0"],
                      params["bih0"], params["bhh0"])
        h1, c1 = cell(h0, h1, c1, params["wih1"], params["whh1"],
                      params["bih1"], params["bhh1"])
        outs.append(h1)
    h_mean = jnp.mean(jnp.stack(outs, axis=1), axis=1)
    h_cat = jnp.concatenate([h_mean, lens], axis=1)

    def lrelu(v):
        return jnp.where(v > 0, v, 0.1 * v)

    a1 = lrelu(h_cat @ params["w_fc1"].T + params["b_fc1"])
    out1 = lrelu(a1 @ params["w_fc2"].T + params["b_fc2"])
    out2 = out1 @ params["w_fc3"].T + params["b_fc3"]
    return out2, out1


# ----------------------------------------------------------------------------
def make_params(key, input_dim, hidden_dim, output_dim):
    H = hidden_dim
    ks = jax.random.split(key, 16)
    s = 0.1
    p = {
        # LSTM layer 0
        "wih0": s * jax.random.normal(ks[0], (4 * H, input_dim), jnp.float32),
        "whh0": s * jax.random.normal(ks[1], (4 * H, H), jnp.float32),
        "bih0": s * jax.random.normal(ks[2], (4 * H,), jnp.float32),
        "bhh0": s * jax.random.normal(ks[3], (4 * H,), jnp.float32),
        # LSTM layer 1
        "wih1": s * jax.random.normal(ks[4], (4 * H, H), jnp.float32),
        "whh1": s * jax.random.normal(ks[5], (4 * H, H), jnp.float32),
        "bih1": s * jax.random.normal(ks[6], (4 * H,), jnp.float32),
        "bhh1": s * jax.random.normal(ks[7], (4 * H,), jnp.float32),
        # head: fc1 (out/2, out+1), fc2 (out/4, out/2), fc3 (1, out/4)
        "w_fc1": s * jax.random.normal(ks[8], (output_dim // 2, output_dim + 1), jnp.float32),
        "b_fc1": s * jax.random.normal(ks[9], (output_dim // 2,), jnp.float32),
        "w_fc2": s * jax.random.normal(ks[10], (output_dim // 4, output_dim // 2), jnp.float32),
        "b_fc2": s * jax.random.normal(ks[11], (output_dim // 4,), jnp.float32),
        "w_fc3": s * jax.random.normal(ks[12], (1, output_dim // 4), jnp.float32),
        "b_fc3": s * jax.random.normal(ks[13], (1,), jnp.float32),
    }
    return p


if __name__ == "__main__":
    # Small shapes consistent with the module's forward:
    # x: (B, T_total, input_dim); hidden_dim == output_dim so fc1 input (H+1) matches.
    B, T_total, input_dim = 2, 9, 16
    hidden_dim = output_dim = 32
    auxi_len = 5

    key = jax.random.PRNGKey(0)
    kx, kp = jax.random.split(key)
    x = jax.random.normal(kx, (B, T_total, input_dim), jnp.float32)
    params = make_params(kp, input_dim, hidden_dim, output_dim)

    out2, out1 = lstmnet_forward(x, params, auxi_len=auxi_len)
    out2, out1 = jax.block_until_ready((out2, out1))

    ref2, ref1 = reference_forward(x, params, auxi_len=auxi_len)
    assert out2.shape == (B, 1) and out1.shape == (B, output_dim // 4)
    # bf16 MXU operands (f32 accumulation / gate math) -> looser tolerance than pure-f32.
    assert jnp.allclose(out2, ref2, atol=5e-2, rtol=5e-2)
    assert jnp.allclose(out1, ref1, atol=5e-2, rtol=5e-2)

    print("KERNEL_OK")
</pallas_src>

<mosaic_0001>
module attributes {stable_mosaic.version = 11 : i64} {
  func.func @lstm_head_kernel(%arg0: i32, %arg1: memref<9x8x16xbf16, #tpu.memory_space<vmem>>, %arg2: memref<8x1xf32, #tpu.memory_space<vmem>>, %arg3: memref<80x256xbf16, #tpu.memory_space<vmem>>, %arg4: memref<1x128xf32, #tpu.memory_space<vmem>>, %arg5: memref<1x128xf32, #tpu.memory_space<vmem>>, %arg6: memref<32x16xbf16, #tpu.memory_space<vmem>>, %arg7: memref<1x16xf32, #tpu.memory_space<vmem>>, %arg8: memref<1x16xf32, #tpu.memory_space<vmem>>, %arg9: memref<16x8xbf16, #tpu.memory_space<vmem>>, %arg10: memref<1x8xf32, #tpu.memory_space<vmem>>, %arg11: memref<8x1xbf16, #tpu.memory_space<vmem>>, %arg12: memref<1x1xf32, #tpu.memory_space<vmem>>, %arg13: memref<8x128xf32, #tpu.memory_space<vmem>>, %arg14: memref<8x80xbf16, #tpu.memory_space<vmem>>) attributes {dimension_semantics = [#tpu.dimension_semantics<parallel>], iteration_bounds = array<i64: 1>, scalar_prefetch = 0 : i64, scratch_operands = 1 : i64, tpu.core_type = #tpu.core_type<tc>, window_params = [{transform_indices = @transform_0, window_bounds = array<i64: 9, 8, 16>}, {transform_indices = @transform_1, window_bounds = array<i64: 8, 1>}, {pipeline_mode = #tpu.pipeline_mode<synchronous>, transform_indices = @transform_2, window_bounds = array<i64: 80, 256>}, {pipeline_mode = #tpu.pipeline_mode<synchronous>, transform_indices = @transform_3, window_bounds = array<i64: 1, 128>}, {pipeline_mode = #tpu.pipeline_mode<synchronous>, transform_indices = @transform_4, window_bounds = array<i64: 1, 128>}, {pipeline_mode = #tpu.pipeline_mode<synchronous>, transform_indices = @transform_5, window_bounds = array<i64: 32, 16>}, {pipeline_mode = #tpu.pipeline_mode<synchronous>, transform_indices = @transform_6, window_bounds = array<i64: 1, 16>}, {pipeline_mode = #tpu.pipeline_mode<synchronous>, transform_indices = @transform_7, window_bounds = array<i64: 1, 16>}, {pipeline_mode = #tpu.pipeline_mode<synchronous>, transform_indices = @transform_8, window_bounds = array<i64: 16, 8>}, {pipeline_mode = #tpu.pipeline_mode<synchronous>, transform_indices = @transform_9, window_bounds = array<i64: 1, 8>}, {pipeline_mode = #tpu.pipeline_mode<synchronous>, transform_indices = @transform_10, window_bounds = array<i64: 8, 1>}, {pipeline_mode = #tpu.pipeline_mode<synchronous>, transform_indices = @transform_11, window_bounds = array<i64: 1, 1>}, {transform_indices = @transform_12, window_bounds = array<i64: 8, 128>}]} {
    %c0 = arith.constant 0 : index
    %c0_0 = arith.constant 0 : index
    %0 = vector.load %arg3[%c0, %c0_0] : memref<80x256xbf16, #tpu.memory_space<vmem>>, vector<80x256xbf16>
    %c0_1 = arith.constant 0 : index
    %c0_2 = arith.constant 0 : index
    %1 = vector.load %arg4[%c0_1, %c0_2] : memref<1x128xf32, #tpu.memory_space<vmem>>, vector<1x128xf32>
    %c0_3 = arith.constant 0 : index
    %c0_4 = arith.constant 0 : index
    %2 = vector.load %arg5[%c0_3, %c0_4] : memref<1x128xf32, #tpu.memory_space<vmem>>, vector<1x128xf32>
    %c0_5 = arith.constant 0 : index
    %c0_6 = arith.constant 0 : index
    %c0_7 = arith.constant 0 : index
    %3 = vector.load %arg1[%c0_5, %c0_6, %c0_7] : memref<9x8x16xbf16, #tpu.memory_space<vmem>>, vector<1x8x16xbf16>
    %4 = vector.shape_cast %3 : vector<1x8x16xbf16> to vector<8x16xbf16>
    %5 = vector.extract_strided_slice %0 {offsets = [64, 0], sizes = [16, 128], strides = [1, 1]} : vector<80x256xbf16> to vector<16x128xbf16>
    %cst = arith.constant dense<0.000000e+00> : vector<8x128xf32>
    %6 = tpu.matmul %4, %5, %cst {dimension_numbers = #tpu.dot_dimension_numbers<[1], [0], [0], [1], [0, 0, 1, 1], [], []>} : vector<8x16xbf16>, vector<16x128xbf16>, vector<8x128xf32> -> vector<8x128xf32>
    %7 = vector.broadcast %1 : vector<1x128xf32> to vector<8x128xf32>
    %8 = arith.addf %6, %7 : vector<8x128xf32>
    %cst_8 = arith.constant 0.000000e+00 : f32
    %9 = vector.broadcast %cst_8 : f32 to vector<8x32xf32>
    %10 = vector.extract_strided_slice %8 {offsets = [0, 0], sizes = [8, 96], strides = [1, 1]} : vector<8x128xf32> to vector<8x96xf32>
    %11 = arith.negf %10 : vector<8x96xf32>
    %12 = math.exp %11 : vector<8x96xf32>
    %cst_9 = arith.constant 1.000000e+00 : f32
    %13 = vector.broadcast %cst_9 : f32 to vector<8x96xf32>
    %14 = arith.addf %13, %12 : vector<8x96xf32>
    %15 = arith.divf %13, %14 : vector<8x96xf32>
    %16 = vector.extract_strided_slice %8 {offsets = [0, 96], sizes = [8, 32], strides = [1, 1]} : vector<8x128xf32> to vector<8x32xf32>
    %17 = math.tanh %16 : vector<8x32xf32>
    %18 = vector.extract_strided_slice %15 {offsets = [0, 0], sizes = [8, 32], strides = [1, 1]} : vector<8x96xf32> to vector<8x32xf32>
    %19 = vector.extract_strided_slice %15 {offsets = [0, 32], sizes = [8, 32], strides = [1, 1]} : vector<8x96xf32> to vector<8x32xf32>
    %20 = vector.extract_strided_slice %15 {offsets = [0, 64], sizes = [8, 32], strides = [1, 1]} : vector<8x96xf32> to vector<8x32xf32>
    %21 = arith.mulf %19, %9 : vector<8x32xf32>
    %22 = arith.mulf %18, %17 : vector<8x32xf32>
    %23 = arith.addf %21, %22 : vector<8x32xf32>
    %24 = math.tanh %23 : vector<8x32xf32>
    %25 = arith.mulf %20, %24 : vector<8x32xf32>
    %26 = arith.truncf %25 : vector<8x32xf32> to vector<8x32xbf16>
    %c0_10 = arith.constant 0 : index
    %c0_11 = arith.constant 0 : index
    %27 = vector.load %arg14[%c0_10, %c0_11] : memref<8x80xbf16, #tpu.memory_space<vmem>>, vector<8x32xbf16>
    tpu.vector_store %arg14[%c0_10, %c0_11], %26 {strides = array<i32>} : memref<8x80xbf16, #tpu.memory_space<vmem>>, vector<8x32xbf16>,
    %28 = arith.truncf %9 : vector<8x32xf32> to vector<8x32xbf16>
    %c0_12 = arith.constant 0 : index
    %c32 = arith.constant 32 : index
    %29 = vector.load %arg14[%c0_12, %c32] : memref<8x80xbf16, #tpu.memory_space<vmem>>, vector<8x32xbf16>
    tpu.vector_store %arg14[%c0_12, %c32], %28 {strides = array<i32>} : memref<8x80xbf16, #tpu.memory_space<vmem>>, vector<8x32xbf16>,
    %c1 = arith.constant 1 : index
    %c0_13 = arith.constant 0 : index
    %c0_14 = arith.constant 0 : index
    %30 = vector.load %arg1[%c1, %c0_13, %c0_14] : memref<9x8x16xbf16, #tpu.memory_space<vmem>>, vector<1x8x16xbf16>
    %31 = vector.shape_cast %30 : vector<1x8x16xbf16> to vector<8x16xbf16>
    %c0_15 = arith.constant 0 : index
    %c64 = arith.constant 64 : index
    %32 = vector.load %arg14[%c0_15, %c64] : memref<8x80xbf16, #tpu.memory_space<vmem>>, vector<8x16xbf16>
    tpu.vector_store %arg14[%c0_15, %c64], %31 {strides = array<i32>} : memref<8x80xbf16, #tpu.memory_space<vmem>>, vector<8x16xbf16>,
    %c0_16 = arith.constant 0 : index
    %c0_17 = arith.constant 0 : index
    %33 = vector.load %arg14[%c0_16, %c0_17] : memref<8x80xbf16, #tpu.memory_space<vmem>>, vector<8x80xbf16>
    %cst_18 = arith.constant dense<0.000000e+00> : vector<8x256xf32>
    %34 = tpu.matmul %33, %0, %cst_18 {dimension_numbers = #tpu.dot_dimension_numbers<[1], [0], [0], [1], [0, 0, 1, 1], [], []>} : vector<8x80xbf16>, vector<80x256xbf16>, vector<8x256xf32> -> vector<8x256xf32>
    %35 = vector.extract_strided_slice %34 {offsets = [0, 128], sizes = [8, 128], strides = [1, 1]} : vector<8x256xf32> to vector<8x128xf32>
    %36 = vector.broadcast %2 : vector<1x128xf32> to vector<8x128xf32>
    %37 = arith.addf %35, %36 : vector<8x128xf32>
    %38 = vector.extract_strided_slice %37 {offsets = [0, 0], sizes = [8, 96], strides = [1, 1]} : vector<8x128xf32> to vector<8x96xf32>
    %39 = arith.negf %38 : vector<8x96xf32>
    %40 = math.exp %39 : vector<8x96xf32>
    %cst_19 = arith.constant 1.000000e+00 : f32
    %41 = vector.broadcast %cst_19 : f32 to vector<8x96xf32>
    %42 = arith.addf %41, %40 : vector<8x96xf32>
    %43 = arith.divf %41, %42 : vector<8x96xf32>
    %44 = vector.extract_strided_slice %37 {offsets = [0, 96], sizes = [8, 32], strides = [1, 1]} : vector<8x128xf32> to vector<8x32xf32>
    %45 = math.tanh %44 : vector<8x32xf32>
    %46 = vector.extract_strided_slice %43 {offsets = [0, 0], sizes = [8, 32], strides = [1, 1]} : vector<8x96xf32> to vector<8x32xf32>
    %47 = vector.extract_strided_slice %43 {offsets = [0, 32], sizes = [8, 32], strides = [1, 1]} : vector<8x96xf32> to vector<8x32xf32>
    %48 = vector.extract_strided_slice %43 {offsets = [0, 64], sizes = [8, 32], strides = [1, 1]} : vector<8x96xf32> to vector<8x32xf32>
    %49 = arith.mulf %47, %9 : vector<8x32xf32>
    %50 = arith.mulf %46, %45 : vector<8x32xf32>
    %51 = arith.addf %49, %50 : vector<8x32xf32>
    %52 = math.tanh %51 : vector<8x32xf32>
    %53 = arith.mulf %48, %52 : vector<8x32xf32>
    %54 = vector.extract_strided_slice %34 {offsets = [0, 0], sizes = [8, 128], strides = [1, 1]} : vector<8x256xf32> to vector<8x128xf32>
    %55 = vector.broadcast %1 : vector<1x128xf32> to vector<8x128xf32>
    %56 = arith.addf %54, %55 : vector<8x128xf32>
    %57 = arith.addf %9, %53 : vector<8x32xf32>
    %58 = vector.extract_strided_slice %56 {offsets = [0, 0], sizes = [8, 96], strides = [1, 1]} : vector<8x128xf32> to vector<8x96xf32>
    %59 = arith.negf %58 : vector<8x96xf32>
    %60 = math.exp %59 : vector<8x96xf32>
    %cst_20 = arith.constant 1.000000e+00 : f32
    %61 = vector.broadcast %cst_20 : f32 to vector<8x96xf32>
    %62 = arith.addf %61, %60 : vector<8x96xf32>
    %63 = arith.divf %61, %62 : vector<8x96xf32>
    %64 = vector.extract_strided_slice %56 {offsets = [0, 96], sizes = [8, 32], strides = [1, 1]} : vector<8x128xf32> to vector<8x32xf32>
    %65 = math.tanh %64 : vector<8x32xf32>
    %66 = vector.extract_strided_slice %63 {offsets = [0, 0], sizes = [8, 32], strides = [1, 1]} : vector<8x96xf32> to vector<8x32xf32>
    %67 = vector.extract_strided_slice %63 {offsets = [0, 32], sizes = [8, 32], strides = [1, 1]} : vector<8x96xf32> to vector<8x32xf32>
    %68 = vector.extract_strided_slice %63 {offsets = [0, 64], sizes = [8, 32], strides = [1, 1]} : vector<8x96xf32> to vector<8x32xf32>
    %69 = arith.mulf %67, %23 : vector<8x32xf32>
    %70 = arith.mulf %66, %65 : vector<8x32xf32>
    %71 = arith.addf %69, %70 : vector<8x32xf32>
    %72 = math.tanh %71 : vector<8x32xf32>
    %73 = arith.mulf %68, %72 : vector<8x32xf32>
    %74 = arith.truncf %73 : vector<8x32xf32> to vector<8x32xbf16>
    %c0_21 = arith.constant 0 : index
    %c0_22 = arith.constant 0 : index
    %75 = vector.load %arg14[%c0_21, %c0_22] : memref<8x80xbf16, #tpu.memory_space<vmem>>, vector<8x32xbf16>
    tpu.vector_store %arg14[%c0_21, %c0_22], %74 {strides = array<i32>} : memref<8x80xbf16, #tpu.memory_space<vmem>>, vector<8x32xbf16>,
    %76 = arith.truncf %53 : vector<8x32xf32> to vector<8x32xbf16>
    %c0_23 = arith.constant 0 : index
    %c32_24 = arith.constant 32 : index
    %77 = vector.load %arg14[%c0_23, %c32_24] : memref<8x80xbf16, #tpu.memory_space<vmem>>, vector<8x32xbf16>
    tpu.vector_store %arg14[%c0_23, %c32_24], %76 {strides = array<i32>} : memref<8x80xbf16, #tpu.memory_space<vmem>>, vector<8x32xbf16>,
    %c2 = arith.constant 2 : index
    %c0_25 = arith.constant 0 : index
    %c0_26 = arith.constant 0 : index
    %78 = vector.load %arg1[%c2, %c0_25, %c0_26] : memref<9x8x16xbf16, #tpu.memory_space<vmem>>, vector<1x8x16xbf16>
    %79 = vector.shape_cast %78 : vector<1x8x16xbf16> to vector<8x16xbf16>
    %c0_27 = arith.constant 0 : index
    %c64_28 = arith.constant 64 : index
    %80 = vector.load %arg14[%c0_27, %c64_28] : memref<8x80xbf16, #tpu.memory_space<vmem>>, vector<8x16xbf16>
    tpu.vector_store %arg14[%c0_27, %c64_28], %79 {strides = array<i32>} : memref<8x80xbf16, #tpu.memory_space<vmem>>, vector<8x16xbf16>,
    %c0_29 = arith.constant 0 : index
    %c0_30 = arith.constant 0 : index
    %81 = vector.load %arg14[%c0_29, %c0_30] : memref<8x80xbf16, #tpu.memory_space<vmem>>, vector<8x80xbf16>
    %cst_31 = arith.constant dense<0.000000e+00> : vector<8x256xf32>
    %82 = tpu.matmul %81, %0, %cst_31 {dimension_numbers = #tpu.dot_dimension_numbers<[1], [0], [0], [1], [0, 0, 1, 1], [], []>} : vector<8x80xbf16>, vector<80x256xbf16>, vector<8x256xf32> -> vector<8x256xf32>
    %83 = vector.extract_strided_slice %82 {offsets = [0, 128], sizes = [8, 128], strides = [1, 1]} : vector<8x256xf32> to vector<8x128xf32>
    %84 = vector.broadcast %2 : vector<1x128xf32> to vector<8x128xf32>
    %85 = arith.addf %83, %84 : vector<8x128xf32>
    %86 = vector.extract_strided_slice %85 {offsets = [0, 0], sizes = [8, 96], strides = [1, 1]} : vector<8x128xf32> to vector<8x96xf32>
    %87 = arith.negf %86 : vector<8x96xf32>
    %88 = math.exp %87 : vector<8x96xf32>
    %cst_32 = arith.constant 1.000000e+00 : f32
    %89 = vector.broadcast %cst_32 : f32 to vector<8x96xf32>
    %90 = arith.addf %89, %88 : vector<8x96xf32>
    %91 = arith.divf %89, %90 : vector<8x96xf32>
    %92 = vector.extract_strided_slice %85 {offsets = [0, 96], sizes = [8, 32], strides = [1, 1]} : vector<8x128xf32> to vector<8x32xf32>
    %93 = math.tanh %92 : vector<8x32xf32>
    %94 = vector.extract_strided_slice %91 {offsets = [0, 0], sizes = [8, 32], strides = [1, 1]} : vector<8x96xf32> to vector<8x32xf32>
    %95 = vector.extract_strided_slice %91 {offsets = [0, 32], sizes = [8, 32], strides = [1, 1]} : vector<8x96xf32> to vector<8x32xf32>
    %96 = vector.extract_strided_slice %91 {offsets = [0, 64], sizes = [8, 32], strides = [1, 1]} : vector<8x96xf32> to vector<8x32xf32>
    %97 = arith.mulf %95, %51 : vector<8x32xf32>
    %98 = arith.mulf %94, %93 : vector<8x32xf32>
    %99 = arith.addf %97, %98 : vector<8x32xf32>
    %100 = math.tanh %99 : vector<8x32xf32>
    %101 = arith.mulf %96, %100 : vector<8x32xf32>
    %102 = vector.extract_strided_slice %82 {offsets = [0, 0], sizes = [8, 128], strides = [1, 1]} : vector<8x256xf32> to vector<8x128xf32>
    %103 = vector.broadcast %1 : vector<1x128xf32> to vector<8x128xf32>
    %104 = arith.addf %102, %103 : vector<8x128xf32>
    %105 = arith.addf %57, %101 : vector<8x32xf32>
    %106 = vector.extract_strided_slice %104 {offsets = [0, 0], sizes = [8, 96], strides = [1, 1]} : vector<8x128xf32> to vector<8x96xf32>
    %107 = arith.negf %106 : vector<8x96xf32>
    %108 = math.exp %107 : vector<8x96xf32>
    %cst_33 = arith.constant 1.000000e+00 : f32
    %109 = vector.broadcast %cst_33 : f32 to vector<8x96xf32>
    %110 = arith.addf %109, %108 : vector<8x96xf32>
    %111 = arith.divf %109, %110 : vector<8x96xf32>
    %112 = vector.extract_strided_slice %104 {offsets = [0, 96], sizes = [8, 32], strides = [1, 1]} : vector<8x128xf32> to vector<8x32xf32>
    %113 = math.tanh %112 : vector<8x32xf32>
    %114 = vector.extract_strided_slice %111 {offsets = [0, 0], sizes = [8, 32], strides = [1, 1]} : vector<8x96xf32> to vector<8x32xf32>
    %115 = vector.extract_strided_slice %111 {offsets = [0, 32], sizes = [8, 32], strides = [1, 1]} : vector<8x96xf32> to vector<8x32xf32>
    %116 = vector.extract_strided_slice %111 {offsets = [0, 64], sizes = [8, 32], strides = [1, 1]} : vector<8x96xf32> to vector<8x32xf32>
    %117 = arith.mulf %115, %71 : vector<8x32xf32>
    %118 = arith.mulf %114, %113 : vector<8x32xf32>
    %119 = arith.addf %117, %118 : vector<8x32xf32>
    %120 = math.tanh %119 : vector<8x32xf32>
    %121 = arith.mulf %116, %120 : vector<8x32xf32>
    %122 = arith.truncf %121 : vector<8x32xf32> to vector<8x32xbf16>
    %c0_34 = arith.constant 0 : index
    %c0_35 = arith.constant 0 : index
    %123 = vector.load %arg14[%c0_34, %c0_35] : memref<8x80xbf16, #tpu.memory_space<vmem>>, vector<8x32xbf16>
    tpu.vector_store %arg14[%c0_34, %c0_35], %122 {strides = array<i32>} : memref<8x80xbf16, #tpu.memory_space<vmem>>, vector<8x32xbf16>,
    %124 = arith.truncf %101 : vector<8x32xf32> to vector<8x32xbf16>
    %c0_36 = arith.constant 0 : index
    %c32_37 = arith.constant 32 : index
    %125 = vector.load %arg14[%c0_36, %c32_37] : memref<8x80xbf16, #tpu.memory_space<vmem>>, vector<8x32xbf16>
    tpu.vector_store %arg14[%c0_36, %c32_37], %124 {strides = array<i32>} : memref<8x80xbf16, #tpu.memory_space<vmem>>, vector<8x32xbf16>,
    %c3 = arith.constant 3 : index
    %c0_38 = arith.constant 0 : index
    %c0_39 = arith.constant 0 : index
    %126 = vector.load %arg1[%c3, %c0_38, %c0_39] : memref<9x8x16xbf16, #tpu.memory_space<vmem>>, vector<1x8x16xbf16>
    %127 = vector.shape_cast %126 : vector<1x8x16xbf16> to vector<8x16xbf16>
    %c0_40 = arith.constant 0 : index
    %c64_41 = arith.constant 64 : index
    %128 = vector.load %arg14[%c0_40, %c64_41] : memref<8x80xbf16, #tpu.memory_space<vmem>>, vector<8x16xbf16>
    tpu.vector_store %arg14[%c0_40, %c64_41], %127 {strides = array<i32>} : memref<8x80xbf16, #tpu.memory_space<vmem>>, vector<8x16xbf16>,
    %c0_42 = arith.constant 0 : index
    %c0_43 = arith.constant 0 : index
    %129 = vector.load %arg14[%c0_42, %c0_43] : memref<8x80xbf16, #tpu.memory_space<vmem>>, vector<8x80xbf16>
    %cst_44 = arith.constant dense<0.000000e+00> : vector<8x256xf32>
    %130 = tpu.matmul %129, %0, %cst_44 {dimension_numbers = #tpu.dot_dimension_numbers<[1], [0], [0], [1], [0, 0, 1, 1], [], []>} : vector<8x80xbf16>, vector<80x256xbf16>, vector<8x256xf32> -> vector<8x256xf32>
    %131 = vector.extract_strided_slice %130 {offsets = [0, 128], sizes = [8, 128], strides = [1, 1]} : vector<8x256xf32> to vector<8x128xf32>
    %132 = vector.broadcast %2 : vector<1x128xf32> to vector<8x128xf32>
    %133 = arith.addf %131, %132 : vector<8x128xf32>
    %134 = vector.extract_strided_slice %133 {offsets = [0, 0], sizes = [8, 96], strides = [1, 1]} : vector<8x128xf32> to vector<8x96xf32>
    %135 = arith.negf %134 : vector<8x96xf32>
    %136 = math.exp %135 : vector<8x96xf32>
    %cst_45 = arith.constant 1.000000e+00 : f32
    %137 = vector.broadcast %cst_45 : f32 to vector<8x96xf32>
    %138 = arith.addf %137, %136 : vector<8x96xf32>
    %139 = arith.divf %137, %138 : vector<8x96xf32>
    %140 = vector.extract_strided_slice %133 {offsets = [0, 96], sizes = [8, 32], strides = [1, 1]} : vector<8x128xf32> to vector<8x32xf32>
    %141 = math.tanh %140 : vector<8x32xf32>
    %142 = vector.extract_strided_slice %139 {offsets = [0, 0], sizes = [8, 32], strides = [1, 1]} : vector<8x96xf32> to vector<8x32xf32>
    %143 = vector.extract_strided_slice %139 {offsets = [0, 32], sizes = [8, 32], strides = [1, 1]} : vector<8x96xf32> to vector<8x32xf32>
    %144 = vector.extract_strided_slice %139 {offsets = [0, 64], sizes = [8, 32], strides = [1, 1]} : vector<8x96xf32> to vector<8x32xf32>
    %145 = arith.mulf %143, %99 : vector<8x32xf32>
    %146 = arith.mulf %142, %141 : vector<8x32xf32>
    %147 = arith.addf %145, %146 : vector<8x32xf32>
    %148 = math.tanh %147 : vector<8x32xf32>
    %149 = arith.mulf %144, %148 : vector<8x32xf32>
    %150 = vector.extract_strided_slice %130 {offsets = [0, 0], sizes = [8, 128], strides = [1, 1]} : vector<8x256xf32> to vector<8x128xf32>
    %151 = vector.broadcast %1 : vector<1x128xf32> to vector<8x128xf32>
    %152 = arith.addf %150, %151 : vector<8x128xf32>
    %153 = arith.addf %105, %149 : vector<8x32xf32>
    %154 = vector.extract_strided_slice %152 {offsets = [0, 0], sizes = [8, 96], strides = [1, 1]} : vector<8x128xf32> to vector<8x96xf32>
    %155 = arith.negf %154 : vector<8x96xf32>
    %156 = math.exp %155 : vector<8x96xf32>
    %cst_46 = arith.constant 1.000000e+00 : f32
    %157 = vector.broadcast %cst_46 : f32 to vector<8x96xf32>
    %158 = arith.addf %157, %156 : vector<8x96xf32>
    %159 = arith.divf %157, %158 : vector<8x96xf32>
    %160 = vector.extract_strided_slice %152 {offsets = [0, 96], sizes = [8, 32], strides = [1, 1]} : vector<8x128xf32> to vector<8x32xf32>
    %161 = math.tanh %160 : vector<8x32xf32>
    %162 = vector.extract_strided_slice %159 {offsets = [0, 0], sizes = [8, 32], strides = [1, 1]} : vector<8x96xf32> to vector<8x32xf32>
    %163 = vector.extract_strided_slice %159 {offsets = [0, 32], sizes = [8, 32], strides = [1, 1]} : vector<8x96xf32> to vector<8x32xf32>
    %164 = vector.extract_strided_slice %159 {offsets = [0, 64], sizes = [8, 32], strides = [1, 1]} : vector<8x96xf32> to vector<8x32xf32>
    %165 = arith.mulf %163, %119 : vector<8x32xf32>
    %166 = arith.mulf %162, %161 : vector<8x32xf32>
    %167 = arith.addf %165, %166 : vector<8x32xf32>
    %168 = math.tanh %167 : vector<8x32xf32>
    %169 = arith.mulf %164, %168 : vector<8x32xf32>
    %170 = arith.truncf %169 : vector<8x32xf32> to vector<8x32xbf16>
    %c0_47 = arith.constant 0 : index
    %c0_48 = arith.constant 0 : index
    %171 = vector.load %arg14[%c0_47, %c0_48] : memref<8x80xbf16, #tpu.memory_space<vmem>>, vector<8x32xbf16>
    tpu.vector_store %arg14[%c0_47, %c0_48], %170 {strides = array<i32>} : memref<8x80xbf16, #tpu.memory_space<vmem>>, vector<8x32xbf16>,
    %172 = arith.truncf %149 : vector<8x32xf32> to vector<8x32xbf16>
    %c0_49 = arith.constant 0 : index
    %c32_50 = arith.constant 32 : index
    %173 = vector.load %arg14[%c0_49, %c32_50] : memref<8x80xbf16, #tpu.memory_space<vmem>>, vector<8x32xbf16>
    tpu.vector_store %arg14[%c0_49, %c32_50], %172 {strides = array<i32>} : memref<8x80xbf16, #tpu.memory_space<vmem>>, vector<8x32xbf16>,
    %c4 = arith.constant 4 : index
    %c0_51 = arith.constant 0 : index
    %c0_52 = arith.constant 0 : index
    %174 = vector.load %arg1[%c4, %c0_51, %c0_52] : memref<9x8x16xbf16, #tpu.memory_space<vmem>>, vector<1x8x16xbf16>
    %175 = vector.shape_cast %174 : vector<1x8x16xbf16> to vector<8x16xbf16>
    %c0_53 = arith.constant 0 : index
    %c64_54 = arith.constant 64 : index
    %176 = vector.load %arg14[%c0_53, %c64_54] : memref<8x80xbf16, #tpu.memory_space<vmem>>, vector<8x16xbf16>
    tpu.vector_store %arg14[%c0_53, %c64_54], %175 {strides = array<i32>} : memref<8x80xbf16, #tpu.memory_space<vmem>>, vector<8x16xbf16>,
    %c0_55 = arith.constant 0 : index
    %c0_56 = arith.constant 0 : index
    %177 = vector.load %arg14[%c0_55, %c0_56] : memref<8x80xbf16, #tpu.memory_space<vmem>>, vector<8x80xbf16>
    %cst_57 = arith.constant dense<0.000000e+00> : vector<8x256xf32>
    %178 = tpu.matmul %177, %0, %cst_57 {dimension_numbers = #tpu.dot_dimension_numbers<[1], [0], [0], [1], [0, 0, 1, 1], [], []>} : vector<8x80xbf16>, vector<80x256xbf16>, vector<8x256xf32> -> vector<8x256xf32>
    %179 = vector.extract_strided_slice %178 {offsets = [0, 128], sizes = [8, 128], strides = [1, 1]} : vector<8x256xf32> to vector<8x128xf32>
    %180 = vector.broadcast %2 : vector<1x128xf32> to vector<8x128xf32>
    %181 = arith.addf %179, %180 : vector<8x128xf32>
    %182 = vector.extract_strided_slice %181 {offsets = [0, 0], sizes = [8, 96], strides = [1, 1]} : vector<8x128xf32> to vector<8x96xf32>
    %183 = arith.negf %182 : vector<8x96xf32>
    %184 = math.exp %183 : vector<8x96xf32>
    %cst_58 = arith.constant 1.000000e+00 : f32
    %185 = vector.broadcast %cst_58 : f32 to vector<8x96xf32>
    %186 = arith.addf %185, %184 : vector<8x96xf32>
    %187 = arith.divf %185, %186 : vector<8x96xf32>
    %188 = vector.extract_strided_slice %181 {offsets = [0, 96], sizes = [8, 32], strides = [1, 1]} : vector<8x128xf32> to vector<8x32xf32>
    %189 = math.tanh %188 : vector<8x32xf32>
    %190 = vector.extract_strided_slice %187 {offsets = [0, 0], sizes = [8, 32], strides = [1, 1]} : vector<8x96xf32> to vector<8x32xf32>
    %191 = vector.extract_strided_slice %187 {offsets = [0, 32], sizes = [8, 32], strides = [1, 1]} : vector<8x96xf32> to vector<8x32xf32>
    %192 = vector.extract_strided_slice %187 {offsets = [0, 64], sizes = [8, 32], strides = [1, 1]} : vector<8x96xf32> to vector<8x32xf32>
    %193 = arith.mulf %191, %147 : vector<8x32xf32>
    %194 = arith.mulf %190, %189 : vector<8x32xf32>
    %195 = arith.addf %193, %194 : vector<8x32xf32>
    %196 = math.tanh %195 : vector<8x32xf32>
    %197 = arith.mulf %192, %196 : vector<8x32xf32>
    %198 = vector.extract_strided_slice %178 {offsets = [0, 0], sizes = [8, 128], strides = [1, 1]} : vector<8x256xf32> to vector<8x128xf32>
    %199 = vector.broadcast %1 : vector<1x128xf32> to vector<8x128xf32>
    %200 = arith.addf %198, %199 : vector<8x128xf32>
    %201 = arith.addf %153, %197 : vector<8x32xf32>
    %202 = vector.extract_strided_slice %200 {offsets = [0, 0], sizes = [8, 96], strides = [1, 1]} : vector<8x128xf32> to vector<8x96xf32>
    %203 = arith.negf %202 : vector<8x96xf32>
    %204 = math.exp %203 : vector<8x96xf32>
    %cst_59 = arith.constant 1.000000e+00 : f32
    %205 = vector.broadcast %cst_59 : f32 to vector<8x96xf32>
    %206 = arith.addf %205, %204 : vector<8x96xf32>
    %207 = arith.divf %205, %206 : vector<8x96xf32>
    %208 = vector.extract_strided_slice %200 {offsets = [0, 96], sizes = [8, 32], strides = [1, 1]} : vector<8x128xf32> to vector<8x32xf32>
    %209 = math.tanh %208 : vector<8x32xf32>
    %210 = vector.extract_strided_slice %207 {offsets = [0, 0], sizes = [8, 32], strides = [1, 1]} : vector<8x96xf32> to vector<8x32xf32>
    %211 = vector.extract_strided_slice %207 {offsets = [0, 32], sizes = [8, 32], strides = [1, 1]} : vector<8x96xf32> to vector<8x32xf32>
    %212 = vector.extract_strided_slice %207 {offsets = [0, 64], sizes = [8, 32], strides = [1, 1]} : vector<8x96xf32> to vector<8x32xf32>
    %213 = arith.mulf %211, %167 : vector<8x32xf32>
    %214 = arith.mulf %210, %209 : vector<8x32xf32>
    %215 = arith.addf %213, %214 : vector<8x32xf32>
    %216 = math.tanh %215 : vector<8x32xf32>
    %217 = arith.mulf %212, %216 : vector<8x32xf32>
    %218 = arith.truncf %217 : vector<8x32xf32> to vector<8x32xbf16>
    %c0_60 = arith.constant 0 : index
    %c0_61 = arith.constant 0 : index
    %219 = vector.load %arg14[%c0_60, %c0_61] : memref<8x80xbf16, #tpu.memory_space<vmem>>, vector<8x32xbf16>
    tpu.vector_store %arg14[%c0_60, %c0_61], %218 {strides = array<i32>} : memref<8x80xbf16, #tpu.memory_space<vmem>>, vector<8x32xbf16>,
    %220 = arith.truncf %197 : vector<8x32xf32> to vector<8x32xbf16>
    %c0_62 = arith.constant 0 : index
    %c32_63 = arith.constant 32 : index
    %221 = vector.load %arg14[%c0_62, %c32_63] : memref<8x80xbf16, #tpu.memory_space<vmem>>, vector<8x32xbf16>
    tpu.vector_store %arg14[%c0_62, %c32_63], %220 {strides = array<i32>} : memref<8x80xbf16, #tpu.memory_space<vmem>>, vector<8x32xbf16>,
    %c5 = arith.constant 5 : index
    %c0_64 = arith.constant 0 : index
    %c0_65 = arith.constant 0 : index
    %222 = vector.load %arg1[%c5, %c0_64, %c0_65] : memref<9x8x16xbf16, #tpu.memory_space<vmem>>, vector<1x8x16xbf16>
    %223 = vector.shape_cast %222 : vector<1x8x16xbf16> to vector<8x16xbf16>
    %c0_66 = arith.constant 0 : index
    %c64_67 = arith.constant 64 : index
    %224 = vector.load %arg14[%c0_66, %c64_67] : memref<8x80xbf16, #tpu.memory_space<vmem>>, vector<8x16xbf16>
    tpu.vector_store %arg14[%c0_66, %c64_67], %223 {strides = array<i32>} : memref<8x80xbf16, #tpu.memory_space<vmem>>, vector<8x16xbf16>,
    %c0_68 = arith.constant 0 : index
    %c0_69 = arith.constant 0 : index
    %225 = vector.load %arg14[%c0_68, %c0_69] : memref<8x80xbf16, #tpu.memory_space<vmem>>, vector<8x80xbf16>
    %cst_70 = arith.constant dense<0.000000e+00> : vector<8x256xf32>
    %226 = tpu.matmul %225, %0, %cst_70 {dimension_numbers = #tpu.dot_dimension_numbers<[1], [0], [0], [1], [0, 0, 1, 1], [], []>} : vector<8x80xbf16>, vector<80x256xbf16>, vector<8x256xf32> -> vector<8x256xf32>
    %227 = vector.extract_strided_slice %226 {offsets = [0, 128], sizes = [8, 128], strides = [1, 1]} : vector<8x256xf32> to vector<8x128xf32>
    %228 = vector.broadcast %2 : vector<1x128xf32> to vector<8x128xf32>
    %229 = arith.addf %227, %228 : vector<8x128xf32>
    %230 = vector.extract_strided_slice %229 {offsets = [0, 0], sizes = [8, 96], strides = [1, 1]} : vector<8x128xf32> to vector<8x96xf32>
    %231 = arith.negf %230 : vector<8x96xf32>
    %232 = math.exp %231 : vector<8x96xf32>
    %cst_71 = arith.constant 1.000000e+00 : f32
    %233 = vector.broadcast %cst_71 : f32 to vector<8x96xf32>
    %234 = arith.addf %233, %232 : vector<8x96xf32>
    %235 = arith.divf %233, %234 : vector<8x96xf32>
    %236 = vector.extract_strided_slice %229 {offsets = [0, 96], sizes = [8, 32], strides = [1, 1]} : vector<8x128xf32> to vector<8x32xf32>
    %237 = math.tanh %236 : vector<8x32xf32>
    %238 = vector.extract_strided_slice %235 {offsets = [0, 0], sizes = [8, 32], strides = [1, 1]} : vector<8x96xf32> to vector<8x32xf32>
    %239 = vector.extract_strided_slice %235 {offsets = [0, 32], sizes = [8, 32], strides = [1, 1]} : vector<8x96xf32> to vector<8x32xf32>
    %240 = vector.extract_strided_slice %235 {offsets = [0, 64], sizes = [8, 32], strides = [1, 1]} : vector<8x96xf32> to vector<8x32xf32>
    %241 = arith.mulf %239, %195 : vector<8x32xf32>
    %242 = arith.mulf %238, %237 : vector<8x32xf32>
    %243 = arith.addf %241, %242 : vector<8x32xf32>
    %244 = math.tanh %243 : vector<8x32xf32>
    %245 = arith.mulf %240, %244 : vector<8x32xf32>
    %246 = vector.extract_strided_slice %226 {offsets = [0, 0], sizes = [8, 128], strides = [1, 1]} : vector<8x256xf32> to vector<8x128xf32>
    %247 = vector.broadcast %1 : vector<1x128xf32> to vector<8x128xf32>
    %248 = arith.addf %246, %247 : vector<8x128xf32>
    %249 = arith.addf %201, %245 : vector<8x32xf32>
    %250 = vector.extract_strided_slice %248 {offsets = [0, 0], sizes = [8, 96], strides = [1, 1]} : vector<8x128xf32> to vector<8x96xf32>
    %251 = arith.negf %250 : vector<8x96xf32>
    %252 = math.exp %251 : vector<8x96xf32>
    %cst_72 = arith.constant 1.000000e+00 : f32
    %253 = vector.broadcast %cst_72 : f32 to vector<8x96xf32>
    %254 = arith.addf %253, %252 : vector<8x96xf32>
    %255 = arith.divf %253, %254 : vector<8x96xf32>
    %256 = vector.extract_strided_slice %248 {offsets = [0, 96], sizes = [8, 32], strides = [1, 1]} : vector<8x128xf32> to vector<8x32xf32>
    %257 = math.tanh %256 : vector<8x32xf32>
    %258 = vector.extract_strided_slice %255 {offsets = [0, 0], sizes = [8, 32], strides = [1, 1]} : vector<8x96xf32> to vector<8x32xf32>
    %259 = vector.extract_strided_slice %255 {offsets = [0, 32], sizes = [8, 32], strides = [1, 1]} : vector<8x96xf32> to vector<8x32xf32>
    %260 = vector.extract_strided_slice %255 {offsets = [0, 64], sizes = [8, 32], strides = [1, 1]} : vector<8x96xf32> to vector<8x32xf32>
    %261 = arith.mulf %259, %215 : vector<8x32xf32>
    %262 = arith.mulf %258, %257 : vector<8x32xf32>
    %263 = arith.addf %261, %262 : vector<8x32xf32>
    %264 = math.tanh %263 : vector<8x32xf32>
    %265 = arith.mulf %260, %264 : vector<8x32xf32>
    %266 = arith.truncf %265 : vector<8x32xf32> to vector<8x32xbf16>
    %c0_73 = arith.constant 0 : index
    %c0_74 = arith.constant 0 : index
    %267 = vector.load %arg14[%c0_73, %c0_74] : memref<8x80xbf16, #tpu.memory_space<vmem>>, vector<8x32xbf16>
    tpu.vector_store %arg14[%c0_73, %c0_74], %266 {strides = array<i32>} : memref<8x80xbf16, #tpu.memory_space<vmem>>, vector<8x32xbf16>,
    %268 = arith.truncf %245 : vector<8x32xf32> to vector<8x32xbf16>
    %c0_75 = arith.constant 0 : index
    %c32_76 = arith.constant 32 : index
    %269 = vector.load %arg14[%c0_75, %c32_76] : memref<8x80xbf16, #tpu.memory_space<vmem>>, vector<8x32xbf16>
    tpu.vector_store %arg14[%c0_75, %c32_76], %268 {strides = array<i32>} : memref<8x80xbf16, #tpu.memory_space<vmem>>, vector<8x32xbf16>,
    %c6 = arith.constant 6 : index
    %c0_77 = arith.constant 0 : index
    %c0_78 = arith.constant 0 : index
    %270 = vector.load %arg1[%c6, %c0_77, %c0_78] : memref<9x8x16xbf16, #tpu.memory_space<vmem>>, vector<1x8x16xbf16>
    %271 = vector.shape_cast %270 : vector<1x8x16xbf16> to vector<8x16xbf16>
    %c0_79 = arith.constant 0 : index
    %c64_80 = arith.constant 64 : index
    %272 = vector.load %arg14[%c0_79, %c64_80] : memref<8x80xbf16, #tpu.memory_space<vmem>>, vector<8x16xbf16>
    tpu.vector_store %arg14[%c0_79, %c64_80], %271 {strides = array<i32>} : memref<8x80xbf16, #tpu.memory_space<vmem>>, vector<8x16xbf16>,
    %c0_81 = arith.constant 0 : index
    %c0_82 = arith.constant 0 : index
    %273 = vector.load %arg14[%c0_81, %c0_82] : memref<8x80xbf16, #tpu.memory_space<vmem>>, vector<8x80xbf16>
    %cst_83 = arith.constant dense<0.000000e+00> : vector<8x256xf32>
    %274 = tpu.matmul %273, %0, %cst_83 {dimension_numbers = #tpu.dot_dimension_numbers<[1], [0], [0], [1], [0, 0, 1, 1], [], []>} : vector<8x80xbf16>, vector<80x256xbf16>, vector<8x256xf32> -> vector<8x256xf32>
    %275 = vector.extract_strided_slice %274 {offsets = [0, 128], sizes = [8, 128], strides = [1, 1]} : vector<8x256xf32> to vector<8x128xf32>
    %276 = vector.broadcast %2 : vector<1x128xf32> to vector<8x128xf32>
    %277 = arith.addf %275, %276 : vector<8x128xf32>
    %278 = vector.extract_strided_slice %277 {offsets = [0, 0], sizes = [8, 96], strides = [1, 1]} : vector<8x128xf32> to vector<8x96xf32>
    %279 = arith.negf %278 : vector<8x96xf32>
    %280 = math.exp %279 : vector<8x96xf32>
    %cst_84 = arith.constant 1.000000e+00 : f32
    %281 = vector.broadcast %cst_84 : f32 to vector<8x96xf32>
    %282 = arith.addf %281, %280 : vector<8x96xf32>
    %283 = arith.divf %281, %282 : vector<8x96xf32>
    %284 = vector.extract_strided_slice %277 {offsets = [0, 96], sizes = [8, 32], strides = [1, 1]} : vector<8x128xf32> to vector<8x32xf32>
    %285 = math.tanh %284 : vector<8x32xf32>
    %286 = vector.extract_strided_slice %283 {offsets = [0, 0], sizes = [8, 32], strides = [1, 1]} : vector<8x96xf32> to vector<8x32xf32>
    %287 = vector.extract_strided_slice %283 {offsets = [0, 32], sizes = [8, 32], strides = [1, 1]} : vector<8x96xf32> to vector<8x32xf32>
    %288 = vector.extract_strided_slice %283 {offsets = [0, 64], sizes = [8, 32], strides = [1, 1]} : vector<8x96xf32> to vector<8x32xf32>
    %289 = arith.mulf %287, %243 : vector<8x32xf32>
    %290 = arith.mulf %286, %285 : vector<8x32xf32>
    %291 = arith.addf %289, %290 : vector<8x32xf32>
    %292 = math.tanh %291 : vector<8x32xf32>
    %293 = arith.mulf %288, %292 : vector<8x32xf32>
    %294 = vector.extract_strided_slice %274 {offsets = [0, 0], sizes = [8, 128], strides = [1, 1]} : vector<8x256xf32> to vector<8x128xf32>
    %295 = vector.broadcast %1 : vector<1x128xf32> to vector<8x128xf32>
    %296 = arith.addf %294, %295 : vector<8x128xf32>
    %297 = arith.addf %249, %293 : vector<8x32xf32>
    %298 = vector.extract_strided_slice %296 {offsets = [0, 0], sizes = [8, 96], strides = [1, 1]} : vector<8x128xf32> to vector<8x96xf32>
    %299 = arith.negf %298 : vector<8x96xf32>
    %300 = math.exp %299 : vector<8x96xf32>
    %cst_85 = arith.constant 1.000000e+00 : f32
    %301 = vector.broadcast %cst_85 : f32 to vector<8x96xf32>
    %302 = arith.addf %301, %300 : vector<8x96xf32>
    %303 = arith.divf %301, %302 : vector<8x96xf32>
    %304 = vector.extract_strided_slice %296 {offsets = [0, 96], sizes = [8, 32], strides = [1, 1]} : vector<8x128xf32> to vector<8x32xf32>
    %305 = math.tanh %304 : vector<8x32xf32>
    %306 = vector.extract_strided_slice %303 {offsets = [0, 0], sizes = [8, 32], strides = [1, 1]} : vector<8x96xf32> to vector<8x32xf32>
    %307 = vector.extract_strided_slice %303 {offsets = [0, 32], sizes = [8, 32], strides = [1, 1]} : vector<8x96xf32> to vector<8x32xf32>
    %308 = vector.extract_strided_slice %303 {offsets = [0, 64], sizes = [8, 32], strides = [1, 1]} : vector<8x96xf32> to vector<8x32xf32>
    %309 = arith.mulf %307, %263 : vector<8x32xf32>
    %310 = arith.mulf %306, %305 : vector<8x32xf32>
    %311 = arith.addf %309, %310 : vector<8x32xf32>
    %312 = math.tanh %311 : vector<8x32xf32>
    %313 = arith.mulf %308, %312 : vector<8x32xf32>
    %314 = arith.truncf %313 : vector<8x32xf32> to vector<8x32xbf16>
    %c0_86 = arith.constant 0 : index
    %c0_87 = arith.constant 0 : index
    %315 = vector.load %arg14[%c0_86, %c0_87] : memref<8x80xbf16, #tpu.memory_space<vmem>>, vector<8x32xbf16>
    tpu.vector_store %arg14[%c0_86, %c0_87], %314 {strides = array<i32>} : memref<8x80xbf16, #tpu.memory_space<vmem>>, vector<8x32xbf16>,
    %316 = arith.truncf %293 : vector<8x32xf32> to vector<8x32xbf16>
    %c0_88 = arith.constant 0 : index
    %c32_89 = arith.constant 32 : index
    %317 = vector.load %arg14[%c0_88, %c32_89] : memref<8x80xbf16, #tpu.memory_space<vmem>>, vector<8x32xbf16>
    tpu.vector_store %arg14[%c0_88, %c32_89], %316 {strides = array<i32>} : memref<8x80xbf16, #tpu.memory_space<vmem>>, vector<8x32xbf16>,
    %c7 = arith.constant 7 : index
    %c0_90 = arith.constant 0 : index
    %c0_91 = arith.constant 0 : index
    %318 = vector.load %arg1[%c7, %c0_90, %c0_91] : memref<9x8x16xbf16, #tpu.memory_space<vmem>>, vector<1x8x16xbf16>
    %319 = vector.shape_cast %318 : vector<1x8x16xbf16> to vector<8x16xbf16>
    %c0_92 = arith.constant 0 : index
    %c64_93 = arith.constant 64 : index
    %320 = vector.load %arg14[%c0_92, %c64_93] : memref<8x80xbf16, #tpu.memory_space<vmem>>, vector<8x16xbf16>
    tpu.vector_store %arg14[%c0_92, %c64_93], %319 {strides = array<i32>} : memref<8x80xbf16, #tpu.memory_space<vmem>>, vector<8x16xbf16>,
    %c0_94 = arith.constant 0 : index
    %c0_95 = arith.constant 0 : index
    %321 = vector.load %arg14[%c0_94, %c0_95] : memref<8x80xbf16, #tpu.memory_space<vmem>>, vector<8x80xbf16>
    %cst_96 = arith.constant dense<0.000000e+00> : vector<8x256xf32>
    %322 = tpu.matmul %321, %0, %cst_96 {dimension_numbers = #tpu.dot_dimension_numbers<[1], [0], [0], [1], [0, 0, 1, 1], [], []>} : vector<8x80xbf16>, vector<80x256xbf16>, vector<8x256xf32> -> vector<8x256xf32>
    %323 = vector.extract_strided_slice %322 {offsets = [0, 128], sizes = [8, 128], strides = [1, 1]} : vector<8x256xf32> to vector<8x128xf32>
    %324 = vector.broadcast %2 : vector<1x128xf32> to vector<8x128xf32>
    %325 = arith.addf %323, %324 : vector<8x128xf32>
    %326 = vector.extract_strided_slice %325 {offsets = [0, 0], sizes = [8, 96], strides = [1, 1]} : vector<8x128xf32> to vector<8x96xf32>
    %327 = arith.negf %326 : vector<8x96xf32>
    %328 = math.exp %327 : vector<8x96xf32>
    %cst_97 = arith.constant 1.000000e+00 : f32
    %329 = vector.broadcast %cst_97 : f32 to vector<8x96xf32>
    %330 = arith.addf %329, %328 : vector<8x96xf32>
    %331 = arith.divf %329, %330 : vector<8x96xf32>
    %332 = vector.extract_strided_slice %325 {offsets = [0, 96], sizes = [8, 32], strides = [1, 1]} : vector<8x128xf32> to vector<8x32xf32>
    %333 = math.tanh %332 : vector<8x32xf32>
    %334 = vector.extract_strided_slice %331 {offsets = [0, 0], sizes = [8, 32], strides = [1, 1]} : vector<8x96xf32> to vector<8x32xf32>
    %335 = vector.extract_strided_slice %331 {offsets = [0, 32], sizes = [8, 32], strides = [1, 1]} : vector<8x96xf32> to vector<8x32xf32>
    %336 = vector.extract_strided_slice %331 {offsets = [0, 64], sizes = [8, 32], strides = [1, 1]} : vector<8x96xf32> to vector<8x32xf32>
    %337 = arith.mulf %335, %291 : vector<8x32xf32>
    %338 = arith.mulf %334, %333 : vector<8x32xf32>
    %339 = arith.addf %337, %338 : vector<8x32xf32>
    %340 = math.tanh %339 : vector<8x32xf32>
    %341 = arith.mulf %336, %340 : vector<8x32xf32>
    %342 = vector.extract_strided_slice %322 {offsets = [0, 0], sizes = [8, 128], strides = [1, 1]} : vector<8x256xf32> to vector<8x128xf32>
    %343 = vector.broadcast %1 : vector<1x128xf32> to vector<8x128xf32>
    %344 = arith.addf %342, %343 : vector<8x128xf32>
    %345 = arith.addf %297, %341 : vector<8x32xf32>
    %346 = vector.extract_strided_slice %344 {offsets = [0, 0], sizes = [8, 96], strides = [1, 1]} : vector<8x128xf32> to vector<8x96xf32>
    %347 = arith.negf %346 : vector<8x96xf32>
    %348 = math.exp %347 : vector<8x96xf32>
    %cst_98 = arith.constant 1.000000e+00 : f32
    %349 = vector.broadcast %cst_98 : f32 to vector<8x96xf32>
    %350 = arith.addf %349, %348 : vector<8x96xf32>
    %351 = arith.divf %349, %350 : vector<8x96xf32>
    %352 = vector.extract_strided_slice %344 {offsets = [0, 96], sizes = [8, 32], strides = [1, 1]} : vector<8x128xf32> to vector<8x32xf32>
    %353 = math.tanh %352 : vector<8x32xf32>
    %354 = vector.extract_strided_slice %351 {offsets = [0, 0], sizes = [8, 32], strides = [1, 1]} : vector<8x96xf32> to vector<8x32xf32>
    %355 = vector.extract_strided_slice %351 {offsets = [0, 32], sizes = [8, 32], strides = [1, 1]} : vector<8x96xf32> to vector<8x32xf32>
    %356 = vector.extract_strided_slice %351 {offsets = [0, 64], sizes = [8, 32], strides = [1, 1]} : vector<8x96xf32> to vector<8x32xf32>
    %357 = arith.mulf %355, %311 : vector<8x32xf32>
    %358 = arith.mulf %354, %353 : vector<8x32xf32>
    %359 = arith.addf %357, %358 : vector<8x32xf32>
    %360 = math.tanh %359 : vector<8x32xf32>
    %361 = arith.mulf %356, %360 : vector<8x32xf32>
    %362 = arith.truncf %361 : vector<8x32xf32> to vector<8x32xbf16>
    %c0_99 = arith.constant 0 : index
    %c0_100 = arith.constant 0 : index
    %363 = vector.load %arg14[%c0_99, %c0_100] : memref<8x80xbf16, #tpu.memory_space<vmem>>, vector<8x32xbf16>
    tpu.vector_store %arg14[%c0_99, %c0_100], %362 {strides = array<i32>} : memref<8x80xbf16, #tpu.memory_space<vmem>>, vector<8x32xbf16>,
    %364 = arith.truncf %341 : vector<8x32xf32> to vector<8x32xbf16>
    %c0_101 = arith.constant 0 : index
    %c32_102 = arith.constant 32 : index
    %365 = vector.load %arg14[%c0_101, %c32_102] : memref<8x80xbf16, #tpu.memory_space<vmem>>, vector<8x32xbf16>
    tpu.vector_store %arg14[%c0_101, %c32_102], %364 {strides = array<i32>} : memref<8x80xbf16, #tpu.memory_space<vmem>>, vector<8x32xbf16>,
    %c8 = arith.constant 8 : index
    %c0_103 = arith.constant 0 : index
    %c0_104 = arith.constant 0 : index
    %366 = vector.load %arg1[%c8, %c0_103, %c0_104] : memref<9x8x16xbf16, #tpu.memory_space<vmem>>, vector<1x8x16xbf16>
    %367 = vector.shape_cast %366 : vector<1x8x16xbf16> to vector<8x16xbf16>
    %c0_105 = arith.constant 0 : index
    %c64_106 = arith.constant 64 : index
    %368 = vector.load %arg14[%c0_105, %c64_106] : memref<8x80xbf16, #tpu.memory_space<vmem>>, vector<8x16xbf16>
    tpu.vector_store %arg14[%c0_105, %c64_106], %367 {strides = array<i32>} : memref<8x80xbf16, #tpu.memory_space<vmem>>, vector<8x16xbf16>,
    %c0_107 = arith.constant 0 : index
    %c0_108 = arith.constant 0 : index
    %369 = vector.load %arg14[%c0_107, %c0_108] : memref<8x80xbf16, #tpu.memory_space<vmem>>, vector<8x80xbf16>
    %cst_109 = arith.constant dense<0.000000e+00> : vector<8x256xf32>
    %370 = tpu.matmul %369, %0, %cst_109 {dimension_numbers = #tpu.dot_dimension_numbers<[1], [0], [0], [1], [0, 0, 1, 1], [], []>} : vector<8x80xbf16>, vector<80x256xbf16>, vector<8x256xf32> -> vector<8x256xf32>
    %371 = vector.extract_strided_slice %370 {offsets = [0, 128], sizes = [8, 128], strides = [1, 1]} : vector<8x256xf32> to vector<8x128xf32>
    %372 = vector.broadcast %2 : vector<1x128xf32> to vector<8x128xf32>
    %373 = arith.addf %371, %372 : vector<8x128xf32>
    %374 = vector.extract_strided_slice %373 {offsets = [0, 0], sizes = [8, 96], strides = [1, 1]} : vector<8x128xf32> to vector<8x96xf32>
    %375 = arith.negf %374 : vector<8x96xf32>
    %376 = math.exp %375 : vector<8x96xf32>
    %cst_110 = arith.constant 1.000000e+00 : f32
    %377 = vector.broadcast %cst_110 : f32 to vector<8x96xf32>
    %378 = arith.addf %377, %376 : vector<8x96xf32>
    %379 = arith.divf %377, %378 : vector<8x96xf32>
    %380 = vector.extract_strided_slice %373 {offsets = [0, 96], sizes = [8, 32], strides = [1, 1]} : vector<8x128xf32> to vector<8x32xf32>
    %381 = math.tanh %380 : vector<8x32xf32>
    %382 = vector.extract_strided_slice %379 {offsets = [0, 0], sizes = [8, 32], strides = [1, 1]} : vector<8x96xf32> to vector<8x32xf32>
    %383 = vector.extract_strided_slice %379 {offsets = [0, 32], sizes = [8, 32], strides = [1, 1]} : vector<8x96xf32> to vector<8x32xf32>
    %384 = vector.extract_strided_slice %379 {offsets = [0, 64], sizes = [8, 32], strides = [1, 1]} : vector<8x96xf32> to vector<8x32xf32>
    %385 = arith.mulf %383, %339 : vector<8x32xf32>
    %386 = arith.mulf %382, %381 : vector<8x32xf32>
    %387 = arith.addf %385, %386 : vector<8x32xf32>
    %388 = math.tanh %387 : vector<8x32xf32>
    %389 = arith.mulf %384, %388 : vector<8x32xf32>
    %390 = arith.addf %345, %389 : vector<8x32xf32>
    %cst_111 = arith.constant 1.250000e-01 : f32
    %391 = vector.broadcast %cst_111 : f32 to vector<8x32xf32>
    %392 = arith.mulf %390, %391 : vector<8x32xf32>
    %c0_112 = arith.constant 0 : index
    %c0_113 = arith.constant 0 : index
    %393 = vector.load %arg2[%c0_112, %c0_113] : memref<8x1xf32, #tpu.memory_space<vmem>>, vector<8x1xf32>
    %394 = arith.truncf %392 : vector<8x32xf32> to vector<8x32xbf16>
    %c0_114 = arith.constant 0 : index
    %c0_115 = arith.constant 0 : index
    %395 = vector.load %arg6[%c0_114, %c0_115] : memref<32x16xbf16, #tpu.memory_space<vmem>>, vector<32x16xbf16>
    %cst_116 = arith.constant dense<0.000000e+00> : vector<8x16xf32>
    %396 = tpu.matmul %394, %395, %cst_116 {dimension_numbers = #tpu.dot_dimension_numbers<[1], [0], [0], [1], [0, 0, 1, 1], [], []>} : vector<8x32xbf16>, vector<32x16xbf16>, vector<8x16xf32> -> vector<8x16xf32>
    %c0_117 = arith.constant 0 : index
    %c0_118 = arith.constant 0 : index
    %397 = vector.load %arg7[%c0_117, %c0_118] : memref<1x16xf32, #tpu.memory_space<vmem>>, vector<1x16xf32>
    %398 = vector.broadcast %393 : vector<8x1xf32> to vector<8x16xf32>
    %399 = vector.broadcast %397 : vector<1x16xf32> to vector<8x16xf32>
    %400 = arith.mulf %398, %399 : vector<8x16xf32>
    %401 = arith.addf %396, %400 : vector<8x16xf32>
    %c0_119 = arith.constant 0 : index
    %c0_120 = arith.constant 0 : index
    %402 = vector.load %arg8[%c0_119, %c0_120] : memref<1x16xf32, #tpu.memory_space<vmem>>, vector<1x16xf32>
    %403 = vector.broadcast %402 : vector<1x16xf32> to vector<8x16xf32>
    %404 = arith.addf %401, %403 : vector<8x16xf32>
    %cst_121 = arith.constant 0.000000e+00 : f32
    %405 = vector.broadcast %cst_121 : f32 to vector<8x16xf32>
    %406 = arith.cmpf ogt, %404, %405 : vector<8x16xf32>
    %cst_122 = arith.constant 1.000000e-01 : f32
    %407 = vector.broadcast %cst_122 : f32 to vector<8x16xf32>
    %408 = arith.mulf %407, %404 : vector<8x16xf32>
    %409 = arith.select %406, %404, %408 : vector<8x16xi1>, vector<8x16xf32>
    %410 = arith.truncf %409 : vector<8x16xf32> to vector<8x16xbf16>
    %c0_123 = arith.constant 0 : index
    %c0_124 = arith.constant 0 : index
    %411 = vector.load %arg9[%c0_123, %c0_124] : memref<16x8xbf16, #tpu.memory_space<vmem>>, vector<16x8xbf16>
    %cst_125 = arith.constant dense<0.000000e+00> : vector<8x8xf32>
    %412 = tpu.matmul %410, %411, %cst_125 {dimension_numbers = #tpu.dot_dimension_numbers<[1], [0], [0], [1], [0, 0, 1, 1], [], []>} : vector<8x16xbf16>, vector<16x8xbf16>, vector<8x8xf32> -> vector<8x8xf32>
    %c0_126 = arith.constant 0 : index
    %c0_127 = arith.constant 0 : index
    %413 = vector.load %arg10[%c0_126, %c0_127] : memref<1x8xf32, #tpu.memory_space<vmem>>, vector<1x8xf32>
    %414 = vector.broadcast %413 : vector<1x8xf32> to vector<8x8xf32>
    %415 = arith.addf %412, %414 : vector<8x8xf32>
    %cst_128 = arith.constant 0.000000e+00 : f32
    %416 = vector.broadcast %cst_128 : f32 to vector<8x8xf32>
    %417 = arith.cmpf ogt, %415, %416 : vector<8x8xf32>
    %cst_129 = arith.constant 1.000000e-01 : f32
    %418 = vector.broadcast %cst_129 : f32 to vector<8x8xf32>
    %419 = arith.mulf %418, %415 : vector<8x8xf32>
    %420 = arith.select %417, %415, %419 : vector<8x8xi1>, vector<8x8xf32>
    %421 = arith.truncf %420 : vector<8x8xf32> to vector<8x8xbf16>
    %c0_130 = arith.constant 0 : index
    %c0_131 = arith.constant 0 : index
    %422 = vector.load %arg11[%c0_130, %c0_131] : memref<8x1xbf16, #tpu.memory_space<vmem>>, vector<8x1xbf16>
    %cst_132 = arith.constant dense<0.000000e+00> : vector<8x1xf32>
    %423 = tpu.matmul %421, %422, %cst_132 {dimension_numbers = #tpu.dot_dimension_numbers<[1], [0], [0], [1], [0, 0, 1, 1], [], []>} : vector<8x8xbf16>, vector<8x1xbf16>, vector<8x1xf32> -> vector<8x1xf32>
    %c0_133 = arith.constant 0 : index
    %c0_134 = arith.constant 0 : index
    %424 = vector.load %arg12[%c0_133, %c0_134] : memref<1x1xf32, #tpu.memory_space<vmem>>, vector<1x1xf32>
    %425 = vector.broadcast %424 : vector<1x1xf32> to vector<8x1xf32>
    %426 = arith.addf %423, %425 : vector<8x1xf32>
    %cst_135 = arith.constant 0.000000e+00 : f32
    %427 = vector.broadcast %cst_135 : f32 to vector<8x119xf32>
    %428 = tpu.concatenate %420, %426, %427 in 1 : vector<8x8xf32>, vector<8x1xf32>, vector<8x119xf32> -> vector<8x128xf32>
    %c0_136 = arith.constant 0 : index
    %c0_137 = arith.constant 0 : index
    %429 = vector.load %arg13[%c0_136, %c0_137] : memref<8x128xf32, #tpu.memory_space<vmem>>, vector<8x128xf32>
    tpu.vector_store %arg13[%c0_136, %c0_137], %428 {strides = array<i32>} : memref<8x128xf32, #tpu.memory_space<vmem>>, vector<8x128xf32>,
    return
  }
  func.func @transform_0(%arg0: i32) -> (i32, i32, i32) {
    %c0_i32 = arith.constant 0 : i32
    %c0_i32_0 = arith.constant 0 : i32
    %c0_i32_1 = arith.constant 0 : i32
    return %c0_i32, %arg0, %c0_i32_0 : i32, i32, i32
  }
  func.func @transform_1(%arg0: i32) -> (i32, i32) {
    %c0_i32 = arith.constant 0 : i32
    %c0_i32_0 = arith.constant 0 : i32
    return %arg0, %c0_i32 : i32, i32
  }
  func.func @transform_2(%arg0: i32) -> (i32, i32) {
    %c0_i32 = arith.constant 0 : i32
    %c0_i32_0 = arith.constant 0 : i32
    %c0_i32_1 = arith.constant 0 : i32
    return %c0_i32, %c0_i32_0 : i32, i32
  }
  func.func @transform_3(%arg0: i32) -> (i32, i32) {
    %c0_i32 = arith.constant 0 : i32
    %c0_i32_0 = arith.constant 0 : i32
    %c0_i32_1 = arith.constant 0 : i32
    return %c0_i32, %c0_i32_0 : i32, i32
  }
  func.func @transform_4(%arg0: i32) -> (i32, i32) {
    %c0_i32 = arith.constant 0 : i32
    %c0_i32_0 = arith.constant 0 : i32
    %c0_i32_1 = arith.constant 0 : i32
    return %c0_i32, %c0_i32_0 : i32, i32
  }
  func.func @transform_5(%arg0: i32) -> (i32, i32) {
    %c0_i32 = arith.constant 0 : i32
    %c0_i32_0 = arith.constant 0 : i32
    %c0_i32_1 = arith.constant 0 : i32
    return %c0_i32, %c0_i32_0 : i32, i32
  }
  func.func @transform_6(%arg0: i32) -> (i32, i32) {
    %c0_i32 = arith.constant 0 : i32
    %c0_i32_0 = arith.constant 0 : i32
    %c0_i32_1 = arith.constant 0 : i32
    return %c0_i32, %c0_i32_0 : i32, i32
  }
  func.func @transform_7(%arg0: i32) -> (i32, i32) {
    %c0_i32 = arith.constant 0 : i32
    %c0_i32_0 = arith.constant 0 : i32
    %c0_i32_1 = arith.constant 0 : i32
    return %c0_i32, %c0_i32_0 : i32, i32
  }
  func.func @transform_8(%arg0: i32) -> (i32, i32) {
    %c0_i32 = arith.constant 0 : i32
    %c0_i32_0 = arith.constant 0 : i32
    %c0_i32_1 = arith.constant 0 : i32
    return %c0_i32, %c0_i32_0 : i32, i32
  }
  func.func @transform_9(%arg0: i32) -> (i32, i32) {
    %c0_i32 = arith.constant 0 : i32
    %c0_i32_0 = arith.constant 0 : i32
    %c0_i32_1 = arith.constant 0 : i32
    return %c0_i32, %c0_i32_0 : i32, i32
  }
  func.func @transform_10(%arg0: i32) -> (i32, i32) {
    %c0_i32 = arith.constant 0 : i32
    %c0_i32_0 = arith.constant 0 : i32
    %c0_i32_1 = arith.constant 0 : i32
    return %c0_i32, %c0_i32_0 : i32, i32
  }
  func.func @transform_11(%arg0: i32) -> (i32, i32) {
    %c0_i32 = arith.constant 0 : i32
    %c0_i32_0 = arith.constant 0 : i32
    %c0_i32_1 = arith.constant 0 : i32
    return %c0_i32, %c0_i32_0 : i32, i32
  }
  func.func @transform_12(%arg0: i32) -> (i32, i32) {
    %c0_i32 = arith.constant 0 : i32
    %c0_i32_0 = arith.constant 0 : i32
    return %arg0, %c0_i32 : i32, i32
  }
}

</mosaic_0001>

<bundles_post_ra>
// kernel: lstmnet_forward.1
= control target key start
LH: loop header
LB: loop body
LE: loop exit
PB: predicated region body
PF: predicated region fallthrough
CT: control target
= control target key end

     0   :  { %vm66_vm0 = vcmask 130048   ;;  %s1501_s29 = smov 32   ;;  %s1502_s18 = smov 64   ;;  %v1503_v43 = vmov 0   ;;  %vm125_vm5 = vcmask 257024   ;;  %vm127_vm6 = vcmask 519424   ;;  %s2007_s2 = inlined_call_operand.vmem [shape: bf16[80,256], index: 2, kind: input, shape index: {}]   ;;  %s2008_s0 = inlined_call_operand.vmem [shape: bf16[9,8,16], index: 0, kind: input, shape index: {}]   ;;  %s2009_s3 = inlined_call_operand.vmem [shape: f32[1,128], index: 3, kind: input, shape index: {}]   ;;  %s2010_s4 = inlined_call_operand.vmem [shape: f32[1,128], index: 4, kind: input, shape index: {}]   ;;  %s2011_s6 = inlined_call_operand.vmem [shape: f32[1,16], index: 6, kind: input, shape index: {}]   ;;  %s2012_s5 = inlined_call_operand.vmem [shape: bf16[32,16], index: 5, kind: input, shape index: {}]   ;;  %s2013_s7 = inlined_call_operand.vmem [shape: f32[1,16], index: 7, kind: input, shape index: {}]   ;;  %s2014_s1 = inlined_call_operand.vmem [shape: f32[8,1], index: 1, kind: input, shape index: {}]   ;;  %s2015_s8 = inlined_call_operand.vmem [shape: bf16[16,8], index: 8, kind: input, shape index: {}]   ;;  %s2016_s9 = inlined_call_operand.vmem [shape: f32[1,8], index: 9, kind: input, shape index: {}]   ;;  %s2017_s10 = inlined_call_operand.vmem [shape: bf16[8,1], index: 10, kind: input, shape index: {}]   ;;  %s2018_s11 = inlined_call_operand.<no memory space> [shape: f32[1,1], index: 11, kind: input, shape index: {}]   ;;  %s2019_s12 = inlined_call_operand.vmem [shape: f32[8,128], index: 12, kind: output, shape index: {}]  }
   0x1   :  { %v1253_v0 = vld [vmem:[%s2007_s2 + $0x40] sm:$0xf]  ;;  %v1355_v1 = vld [vmem:[%s2007_s2 + $0x44] sm:$0xf0]  ;;  %v1257_v28 = vld [vmem:[%s2008_s0 + $0x4] sm:$0xf]  ;;  %1364 = vset.pattern.permute.xlu0 %v1503_v43 }
   0x2   :  { %v1577_v2 = vor.u32 %v1355_v1, %v1253_v0  ;;  %v56_v3 = vld [vmem:[%s2008_s0] sm:$0xf]  ;;  %v1354_v29 = vld [vmem:[%s2007_s2 + $0x44] sm:$0xf]  ;;  %v1290_v30 = vld [vmem:[%s2007_s2 + $0x48] sm:$0xf0]  ;;  %132 = vrot.lane.b32.xlu2 %v1257_v28, %s1502_s18 }
   0x3   :  { %v1589_v4 = vld [vmem:[%s2009_s3] ss:$0 sm:$0xff]  ;;  %v1608_v31 = vor.u32 %v1354_v29, %v1290_v30  ;;  %v1284_v32 = vld [vmem:[%s2007_s2 + $0x30] sm:$0xf]  ;;  %v1353_v33 = vld [vmem:[%s2007_s2 + $0x34] sm:$0xf0] }
   0x4   :  { %77 = vmatpush.bf16.msra.mxu2 %v1577_v2  ;;  %189 = vmatpush.bf16.msra.mxu1 %v1577_v2  ;;  %v1352_v34 = vld [vmem:[%s2007_s2 + $0x34] sm:$0xf]  ;;  %v1619_v35 = vor.u32 %v1353_v33, %v1284_v32  ;;  %v1286_v36 = vld [vmem:[%s2007_s2 + $0x38] sm:$0xf0]  ;;  %v1276_v37 = vld [vmem:[%s2007_s2 + $0x20] sm:$0xf] }
   0x5   :  { %318 = vmatpush.bf16.msra.mxu3 %v1577_v2  ;;  %v1351_v38 = vld [vmem:[%s2007_s2 + $0x24] sm:$0xf0]  ;;  %v1631_v39 = vor.u32 %v1352_v34, %v1286_v36  ;;  %331 = vmatpush.bf16.msra.mxu0 %v1608_v31  ;;  %v1350_v41 = vld [vmem:[%s2007_s2 + $0x24] sm:$0xf]  ;;  %v1278_v42 = vld [vmem:[%s2007_s2 + $0x28] sm:$0xf0] }
   0x6   :  { %v1635_v40 = vor.u32 %v1351_v38, %v1276_v37  ;;  %v1645_v44 = vor.u32 %v1350_v41, %v1278_v42  ;;  %v1268_v48 = vld [vmem:[%s2007_s2 + $0x10] sm:$0xf]  ;;  %v1349_v49 = vld [vmem:[%s2007_s2 + $0x14] sm:$0xf0]  ;;  %v1348_v50 = vld [vmem:[%s2007_s2 + $0x14] sm:$0xf] }
   0x7   :  { %1255 = vmatmul.msk.bf16.vlgmr.msra.gmra.mxu2 %vm66_vm0, %v56_v3  ;;  %v1662_v51 = vor.u32 %v1349_v49, %v1268_v48  ;;  %v1270_v52 = vld [vmem:[%s2007_s2 + $0x18] sm:$0xf0]  ;;  %v1260_v54 = vld [vmem:[%s2007_s2] sm:$0xf]  ;;  %v1347_v55 = vld [vmem:[%s2007_s2 + $0x4] sm:$0xf0] }
   0x8   :  { %202 = vmatpush.bf16.msrb.mxu2 %v1608_v31  ;;  %190 = vmatpush.bf16.msra.mxu1 %v1619_v35  ;;  %v1667_v53 = vor.u32 %v1348_v50, %v1270_v52  ;;  %v1346_v56 = vld [vmem:[%s2007_s2 + $0x4] sm:$0xf]  ;;  %v1682_v57 = vor.u32 %v1347_v55, %v1260_v54  ;;  %v1262_v58 = vld [vmem:[%s2007_s2 + $0x8] sm:$0xf0]  ;;  %vm135_vm7 = vcmask 650752   ;;  %vm182_vm8 = vcmask 654336  }
   0x9   :  { %319 = vmatpush.bf16.msra.mxu3 %v1619_v35  ;;  %332 = vmatpush.bf16.msra.mxu0 %v1631_v39  ;;  %v1687_v59 = vor.u32 %v1346_v56, %v1262_v58  ;;  %v1732_v1 = vld [vmem:[%s2010_s4] ss:$0 sm:$0xff]  ;;  %s1504_s22 = smov 96  }
   0xc   :  { %203 = vmatpush.bf16.msrb.mxu2 %v1631_v39  ;;  %191 = vmatpush.bf16.msra.mxu1 %v1635_v40 }
   0xd   :  { %320 = vmatpush.bf16.msra.mxu3 %v1635_v40  ;;  %333 = vmatpush.bf16.msra.mxu0 %v1645_v44 }
  0x10   :  { %204 = vmatpush.bf16.msrb.mxu2 %v1645_v44  ;;  %192 = vmatpush.bf16.msra.mxu1 %v1662_v51 }
  0x11   :  { %321 = vmatpush.bf16.msra.mxu3 %v1662_v51  ;;  %334 = vmatpush.bf16.msra.mxu0 %v1667_v53 }
  0x14   :  { %205 = vmatpush.bf16.msrb.mxu2 %v1667_v53  ;;  %193 = vmatpush.bf16.msra.mxu1 %v1682_v57 }
  0x15   :  { %322 = vmatpush.bf16.msra.mxu3 %v1682_v57  ;;  %335 = vmatpush.bf16.msra.mxu0 %v1687_v59 }
  0x18   :  { %206 = vmatpush.bf16.msrb.mxu2 %v1687_v59  ;;  %444 = vmatpush.bf16.msrb.mxu1 %v1577_v2 }
  0x19   :  { %570 = vmatpush.bf16.msrb.mxu3 %v1577_v2  ;;  %583 = vmatpush.bf16.msrb.mxu0 %v1608_v31 }
  0x1c   :  { %457 = vmatpush.bf16.msra.mxu2 %v1608_v31  ;;  %445 = vmatpush.bf16.msrb.mxu1 %v1619_v35 }
  0x1d   :  { %571 = vmatpush.bf16.msrb.mxu3 %v1619_v35  ;;  %584 = vmatpush.bf16.msrb.mxu0 %v1631_v39 }
  0x20   :  { %458 = vmatpush.bf16.msra.mxu2 %v1631_v39  ;;  %446 = vmatpush.bf16.msrb.mxu1 %v1635_v40 }
  0x21   :  { %572 = vmatpush.bf16.msrb.mxu3 %v1635_v40  ;;  %585 = vmatpush.bf16.msrb.mxu0 %v1645_v44 }
  0x24   :  { %459 = vmatpush.bf16.msra.mxu2 %v1645_v44  ;;  %447 = vmatpush.bf16.msrb.mxu1 %v1662_v51 }
  0x25   :  { %573 = vmatpush.bf16.msrb.mxu3 %v1662_v51  ;;  %586 = vmatpush.bf16.msrb.mxu0 %v1667_v53 }
  0x28   :  { %460 = vmatpush.bf16.msra.mxu2 %v1667_v53  ;;  %448 = vmatpush.bf16.msrb.mxu1 %v1682_v57 }
  0x29   :  { %574 = vmatpush.bf16.msrb.mxu3 %v1682_v57  ;;  %587 = vmatpush.bf16.msrb.mxu0 %v1687_v59 }
  0x2c   :  { %461 = vmatpush.bf16.msra.mxu2 %v1687_v59 }
  0x5c   :  { %v133_v61 = vpop.permute.xlu2 %132 }
  0x8a   :  { %v79_v5 = vpop.f32.mrf.mxu2 }
  0x8b   :  { %v80_v6 = vadd.f32 %v1589_v4, %v79_v5 }
  0x8d   :  { %1371 = vtanh.f32 %v80_v6  ;;  %v1256_v9 = vmul.f32 -1.442695, %v80_v6 }
  0x8f   :  { %1373 = vpow2.f32 %v1256_v9 }
  0x92   :  { %v81_v7 = vpop.f32.mrf.mxu2 }
  0x93   :  { %v1372_v8 = vpop.eup %1371 }
  0x94   :  { %105 = vrot.lane.b32.xlu0 %v1372_v8, %s1501_s29 }
  0x95   :  { %v1374_v10 = vpop.eup %1373 }
  0x96   :  { %v86_v11 = vadd.f32 1.0, %v1374_v10 }
  0x98   :  { %1375 = vrcp.f32 %v86_v11  ;;  %v98_v17 = vand.u32 2147483648, %v86_v11  ;;  %vm92_vm2 = vweird.f32 %v86_v11  ;;  %v96_v18 = vand.u32 2147483647, %v86_v11 }
  0x9a   :  { %v99_v20 = vor.u32 1.1754944e-38, %v98_v17  ;;  %vm97_vm4 = vcmp.eq.f32.partialorder %v96_v18, 8.507059e+37 }
  0x9e   :  { %v1376_v12 = vpop.eup %1375 }
  0x9f   :  { %v88_v13 = vmul.f32 %v1376_v12, %v86_v11  ;;  %vm93_vm1 = vweird.f32 %v1376_v12 }
  0xa0   :  { %vm94_vm3 = vmor %vm92_vm2, %vm93_vm1 }
  0xa1   :  { %v89_v14 = vsub.f32 1.0, %v88_v13 }
  0xa3   :  { %v90_v15 = vmul.f32 %v1376_v12, %v89_v14 }
  0xa5   :  { %v91_v16 = vadd.f32 %v1376_v12, %v90_v15 }
  0xa7   :  { %v95_v19 = vsel %vm94_vm3, %v1376_v12, %v91_v16 }
  0xa8   :  { %v100_v22 = vsel %vm97_vm4, %v99_v20, %v95_v19 }
  0xa9   :  { %v103_v24 = vmul.f32 0.0, %v100_v22 }
 0x106   :  { %v106_v21 = vpop.permute.xlu0 %105 }
 0x107   :  { %v108_v23 = vmul.f32 %v106_v21, %v100_v22 }
 0x109   :  { %110 = vrot.lane.b32.xlu0 %v108_v23, %s1501_s29 }
 0x17b   :  { %v111_v25 = vpop.permute.xlu0 %110 }
 0x17c   :  { %v1594_v26 = vadd.f32 %v111_v25, %v103_v24 }
 0x17e   :  { %1377 = vtanh.f32 %v1594_v26 }
 0x184   :  { %v1378_v27 = vpop.eup %1377 }
 0x185   :  { %116 = vrot.lane.b32.xlu1 %v1378_v27, %s1501_s29 }
 0x1f7   :  { %v117_v45 = vpop.permute.xlu1 %116 }
 0x1f8   :  { %v119_v46 = vmul.f32 %v117_v45, %v100_v22 }
 0x1fa   :  { %v120_v47 = vpack.c.bf16 %v119_v46, %v119_v46 }
 0x1fc   :  { %122 = vrot.lane.b32.xlu1 %v120_v47, %s1502_s18 }
 0x26e   :  { %v123_v60 = vpop.permute.xlu1 %122 }
 0x26f   :  { %126 = vst.msk [vmem:[#allocation2] sm:$0xf] %vm125_vm5, %v123_v60 }
 0x270   :  { %128 = vst.msk [vmem:[#allocation2] sm:$0xf] %vm127_vm6, %v1503_v43 }
 0x271   :  { %136 = vst.msk [vmem:[#allocation2] sm:$0xf] %vm135_vm7, %v133_v61 }
 0x278   :  { %v137_v62 = vld [vmem:[#allocation2] sm:$0xf] }
 0x279   :  { %1294 = vmatmul.msk.bf16.vlgmr.msra.gmra.mxu1 %vm182_vm8, %v137_v62  ;;  %1295 = vmatmul.msk.bf16.vlgmr.msrb.gmra.mxu2 %vm182_vm8, %v137_v62 }
 0x27a   :  { %696 = vmatpush.bf16.msra.mxu1 %v1577_v2  ;;  %709 = vmatpush.bf16.msrb.mxu2 %v1608_v31 }
 0x27e   :  { %697 = vmatpush.bf16.msra.mxu1 %v1619_v35  ;;  %710 = vmatpush.bf16.msrb.mxu2 %v1631_v39 }
 0x282   :  { %698 = vmatpush.bf16.msra.mxu1 %v1635_v40  ;;  %711 = vmatpush.bf16.msrb.mxu2 %v1645_v44 }
 0x286   :  { %699 = vmatpush.bf16.msra.mxu1 %v1662_v51  ;;  %712 = vmatpush.bf16.msrb.mxu2 %v1667_v53 }
 0x28a   :  { %700 = vmatpush.bf16.msra.mxu1 %v1682_v57  ;;  %713 = vmatpush.bf16.msrb.mxu2 %v1687_v59 }
 0x2f6   :  { %v195_v63 = vpop.f32.mrf.mxu1 }
 0x2f7   :  { %v253_v0 = vadd.f32 %v1589_v4, %v195_v63 }
 0x2f9   :  { %1379 = vtanh.f32 %v253_v0  ;;  %v1297_v10 = vmul.f32 -1.442695, %v253_v0 }
 0x2fc   :  { %v208_v3 = vpop.f32.mrf.mxu2 }
 0x2fd   :  { %v215_v5 = vadd.f32 %v1732_v1, %v208_v3 }
 0x2fe   :  { %v197_v6 = vpop.f32.mrf.mxu1 }
 0x2ff   :  { %v1380_v7 = vpop.eup %1379  ;;  %1381 = vtanh.f32 %v215_v5  ;;  %v1296_v15 = vmul.f32 -1.442695, %v215_v5 }
 0x300   :  { %277 = vrot.lane.b32.xlu2 %v1380_v7, %s1501_s29  ;;  %1383 = vpow2.f32 %v1297_v10 }
 0x304   :  { %v210_v8 = vpop.f32.mrf.mxu2 }
 0x305   :  { %v1382_v9 = vpop.eup %1381 }
 0x306   :  { %238 = vrot.lane.b32.xlu0 %v1382_v9, %s1501_s29  ;;  %v1384_v11 = vpop.eup %1383 }
 0x307   :  { %v258_v12 = vadd.f32 1.0, %v1384_v11 }
 0x309   :  { %1385 = vrcp.f32 %v258_v12  ;;  %v270_v19 = vand.u32 2147483648, %v258_v12  ;;  %vm264_vm10 = vweird.f32 %v258_v12  ;;  %v268_v21 = vand.u32 2147483647, %v258_v12 }
 0x30a   :  { %1387 = vpow2.f32 %v1296_v15 }
 0x30b   :  { %v271_v24 = vor.u32 1.1754944e-38, %v270_v19  ;;  %vm269_vm12 = vcmp.eq.f32.partialorder %v268_v21, 8.507059e+37 }
 0x30f   :  { %v1386_v13 = vpop.eup %1385 }
 0x310   :  { %v260_v14 = vmul.f32 %v1386_v13, %v258_v12  ;;  %vm265_vm9 = vweird.f32 %v1386_v13  ;;  %v1388_v20 = vpop.eup %1387 }
 0x311   :  { %vm266_vm11 = vmor %vm264_vm10, %vm265_vm9  ;;  %v219_v23 = vadd.f32 1.0, %v1388_v20 }
 0x312   :  { %v261_v16 = vsub.f32 1.0, %v260_v14 }
 0x313   :  { %1389 = vrcp.f32 %v219_v23  ;;  %v231_v36 = vand.u32 2147483648, %v219_v23  ;;  %vm225_vm14 = vweird.f32 %v219_v23  ;;  %v229_v37 = vand.u32 2147483647, %v219_v23 }
 0x314   :  { %v262_v17 = vmul.f32 %v1386_v13, %v261_v16 }
 0x315   :  { %v232_v41 = vor.u32 1.1754944e-38, %v231_v36  ;;  %vm230_vm1 = vcmp.eq.f32.partialorder %v229_v37, 8.507059e+37 }
 0x316   :  { %v263_v18 = vadd.f32 %v1386_v13, %v262_v17 }
 0x318   :  { %v267_v22 = vsel %vm266_vm11, %v1386_v13, %v263_v18 }
 0x319   :  { %v272_v27 = vsel %vm269_vm12, %v271_v24, %v267_v22  ;;  %v1390_v29 = vpop.eup %1389 }
 0x31a   :  { %v221_v30 = vmul.f32 %v1390_v29, %v219_v23  ;;  %vm226_vm13 = vweird.f32 %v1390_v29  ;;  %v275_v46 = vmul.f32 %v272_v27, %v1594_v26  ;;  %v1298_v26 = vld [vmem:[%s2008_s0 + $0x8] sm:$0xf] }
 0x31b   :  { %vm227_vm15 = vmor %vm225_vm14, %vm226_vm13 }
 0x31c   :  { %v222_v32 = vsub.f32 1.0, %v221_v30 }
 0x31e   :  { %v223_v33 = vmul.f32 %v1390_v29, %v222_v32 }
 0x320   :  { %v224_v34 = vadd.f32 %v1390_v29, %v223_v33 }
 0x322   :  { %v228_v38 = vsel %vm227_vm15, %v1390_v29, %v224_v34 }
 0x323   :  { %v233_v43 = vsel %vm230_vm1, %v232_v41, %v228_v38 }
 0x324   :  { %v236_v49 = vmul.f32 0.0, %v233_v43 }
 0x35a   :  { %v278_v25 = vpop.permute.xlu2 %277 }
 0x35b   :  { %v280_v28 = vmul.f32 %v278_v25, %v272_v27 }
 0x35d   :  { %282 = vrot.lane.b32.xlu1 %v280_v28, %s1501_s29 }
 0x378   :  { %v239_v42 = vpop.permute.xlu0 %238 }
 0x379   :  { %v241_v45 = vmul.f32 %v239_v42, %v233_v43 }
 0x37b   :  { %243 = vrot.lane.b32.xlu2 %v241_v45, %s1501_s29 }
 0x3cf   :  { %v283_v47 = vpop.permute.xlu1 %282 }
 0x3d0   :  { %v1740_v48 = vadd.f32 %v283_v47, %v275_v46 }
 0x3d2   :  { %1391 = vtanh.f32 %v1740_v48 }
 0x3d5   :  { %v244_v50 = vpop.permute.xlu2 %243 }
 0x3d6   :  { %v1743_v52 = vadd.f32 %v244_v50, %v236_v49 }
 0x3d8   :  { %v1392_v54 = vpop.eup %1391  ;;  %1393 = vtanh.f32 %v1743_v52 }
 0x3d9   :  { %288 = vrot.lane.b32.xlu0 %v1392_v54, %s1501_s29 }
 0x3de   :  { %v1394_v55 = vpop.eup %1393 }
 0x3df   :  { %249 = vrot.lane.b32.xlu1 %v1394_v55, %s1501_s29 }
 0x3e7   :  { %307 = vrot.lane.b32.xlu1 %v1298_v26, %s1502_s18 }
 0x44b   :  { %v289_v56 = vpop.permute.xlu0 %288 }
 0x44c   :  { %v291_v58 = vmul.f32 %v289_v56, %v272_v27 }
 0x44e   :  { %v292_v60 = vpack.c.bf16 %v291_v58, %v291_v58 }
 0x450   :  { %294 = vrot.lane.b32.xlu2 %v292_v60, %s1502_s18 }
 0x451   :  { %v250_v61 = vpop.permute.xlu1 %249 }
 0x452   :  { %v1753_v62 = vmul.f32 %v250_v61, %v233_v43 }
 0x454   :  { %v298_v63 = vpack.c.bf16 %v1753_v62, %v1753_v62 }
 0x456   :  { %300 = vrot.lane.b32.xlu0 %v298_v63, %s1504_s22 }
 0x459   :  { %v308_v3 = vpop.permute.xlu1 %307 }
 0x4aa   :  { %v295_v0 = vpop.permute.xlu2 %294 }
 0x4ab   :  { %297 = vst.msk [vmem:[#allocation2] sm:$0xf] %vm125_vm5, %v295_v0 }
 0x4c8   :  { %v301_v5 = vpop.permute.xlu0 %300 }
 0x4c9   :  { %303 = vst.msk [vmem:[#allocation2] sm:$0xf] %vm127_vm6, %v301_v5 }
 0x4ca   :  { %310 = vst.msk [vmem:[#allocation2] sm:$0xf] %vm135_vm7, %v308_v3 }
 0x4d1   :  { %v311_v6 = vld [vmem:[#allocation2] sm:$0xf] }
 0x4d2   :  { %1299 = vmatmul.msk.bf16.vlgmr.msra.gmra.mxu3 %vm182_vm8, %v311_v6  ;;  %1300 = vmatmul.msk.bf16.vlgmr.msra.gmra.mxu0 %vm182_vm8, %v311_v6 }
 0x4d3   :  { %822 = vmatpush.bf16.msra.mxu3 %v1577_v2  ;;  %835 = vmatpush.bf16.msra.mxu0 %v1608_v31 }
 0x4d7   :  { %823 = vmatpush.bf16.msra.mxu3 %v1619_v35  ;;  %836 = vmatpush.bf16.msra.mxu0 %v1631_v39 }
 0x4db   :  { %824 = vmatpush.bf16.msra.mxu3 %v1635_v40  ;;  %837 = vmatpush.bf16.msra.mxu0 %v1645_v44 }
 0x4df   :  { %825 = vmatpush.bf16.msra.mxu3 %v1662_v51  ;;  %838 = vmatpush.bf16.msra.mxu0 %v1667_v53 }
 0x4e3   :  { %826 = vmatpush.bf16.msra.mxu3 %v1682_v57  ;;  %839 = vmatpush.bf16.msra.mxu0 %v1687_v59 }
 0x54f   :  { %v337_v7 = vpop.f32.mrf.mxu0 }
 0x550   :  { %v341_v8 = vadd.f32 %v1732_v1, %v337_v7 }
 0x552   :  { %1395 = vtanh.f32 %v341_v8  ;;  %v1301_v18 = vmul.f32 -1.442695, %v341_v8 }
 0x555   :  { %v324_v9 = vpop.f32.mrf.mxu3 }
 0x556   :  { %v379_v10 = vadd.f32 %v1589_v4, %v324_v9 }
 0x557   :  { %v339_v11 = vpop.f32.mrf.mxu0 }
 0x558   :  { %v1396_v12 = vpop.eup %1395  ;;  %1397 = vtanh.f32 %v379_v10  ;;  %v1302_v15 = vmul.f32 -1.442695, %v379_v10 }
 0x559   :  { %364 = vrot.lane.b32.xlu0 %v1396_v12, %s1501_s29 }
 0x55a   :  { %1399 = vpow2.f32 %v1302_v15 }
 0x55d   :  { %v326_v13 = vpop.f32.mrf.mxu3 }
 0x55e   :  { %v1398_v14 = vpop.eup %1397 }
 0x55f   :  { %403 = vrot.lane.b32.xlu2 %v1398_v14, %s1501_s29 }
 0x560   :  { %v1400_v16 = vpop.eup %1399 }
 0x561   :  { %v384_v17 = vadd.f32 1.0, %v1400_v16 }
 0x563   :  { %1401 = vrcp.f32 %v384_v17  ;;  %v396_v27 = vand.u32 2147483648, %v384_v17  ;;  %vm390_vm3 = vweird.f32 %v384_v17  ;;  %v394_v28 = vand.u32 2147483647, %v384_v17 }
 0x564   :  { %1403 = vpow2.f32 %v1301_v18 }
 0x565   :  { %v397_v32 = vor.u32 1.1754944e-38, %v396_v27  ;;  %vm395_vm9 = vcmp.eq.f32.partialorder %v394_v28, 8.507059e+37 }
 0x569   :  { %v1402_v19 = vpop.eup %1401 }
 0x56a   :  { %v386_v20 = vmul.f32 %v1402_v19, %v384_v17  ;;  %v1404_v21 = vpop.eup %1403  ;;  %vm391_vm2 = vweird.f32 %v1402_v19 }
 0x56b   :  { %v345_v23 = vadd.f32 1.0, %v1404_v21  ;;  %vm392_vm4 = vmor %vm390_vm3, %vm391_vm2 }
 0x56c   :  { %v387_v22 = vsub.f32 1.0, %v386_v20 }
 0x56d   :  { %1405 = vrcp.f32 %v345_v23  ;;  %v357_v43 = vand.u32 2147483648, %v345_v23  ;;  %vm351_vm11 = vweird.f32 %v345_v23  ;;  %v355_v45 = vand.u32 2147483647, %v345_v23 }
 0x56e   :  { %v388_v24 = vmul.f32 %v1402_v19, %v387_v22 }
 0x56f   :  { %v358_v47 = vor.u32 1.1754944e-38, %v357_v43  ;;  %vm356_vm13 = vcmp.eq.f32.partialorder %v355_v45, 8.507059e+37 }
 0x570   :  { %v389_v25 = vadd.f32 %v1402_v19, %v388_v24 }
 0x572   :  { %v393_v30 = vsel %vm392_vm4, %v1402_v19, %v389_v25 }
 0x573   :  { %v1406_v29 = vpop.eup %1405  ;;  %v398_v36 = vsel %vm395_vm9, %v397_v32, %v393_v30 }
 0x574   :  { %v347_v33 = vmul.f32 %v1406_v29, %v345_v23  ;;  %vm352_vm10 = vweird.f32 %v1406_v29  ;;  %v401_v58 = vmul.f32 %v398_v36, %v1740_v48 }
 0x575   :  { %vm353_vm12 = vmor %vm351_vm11, %vm352_vm10 }
 0x576   :  { %v348_v38 = vsub.f32 1.0, %v347_v33 }
 0x578   :  { %v349_v41 = vmul.f32 %v1406_v29, %v348_v38 }
 0x57a   :  { %v350_v42 = vadd.f32 %v1406_v29, %v349_v41 }
 0x57c   :  { %v354_v46 = vsel %vm353_vm12, %v1406_v29, %v350_v42 }
 0x57d   :  { %v359_v50 = vsel %vm356_vm13, %v358_v47, %v354_v46 }
 0x57e   :  { %v362_v55 = vmul.f32 %v359_v50, %v1743_v52  ;;  %v1303_v52 = vld [vmem:[%s2008_s0 + $0xc] sm:$0xf] }
 0x5b9   :  { %v404_v34 = vpop.permute.xlu2 %403 }
 0x5ba   :  { %v406_v37 = vmul.f32 %v404_v34, %v398_v36 }
 0x5bc   :  { %408 = vrot.lane.b32.xlu1 %v406_v37, %s1501_s29 }
 0x5cb   :  { %v365_v49 = vpop.permute.xlu0 %364 }
 0x5cc   :  { %v367_v54 = vmul.f32 %v365_v49, %v359_v50 }
 0x5ce   :  { %369 = vrot.lane.b32.xlu2 %v367_v54, %s1501_s29 }
 0x628   :  { %v370_v26 = vpop.permute.xlu2 %369 }
 0x629   :  { %v1780_v56 = vadd.f32 %v370_v26, %v362_v55 }
 0x62b   :  { %1407 = vtanh.f32 %v1780_v56 }
 0x62e   :  { %v409_v60 = vpop.permute.xlu1 %408 }
 0x62f   :  { %v1784_v61 = vadd.f32 %v409_v60, %v401_v58 }
 0x631   :  { %v1408_v63 = vpop.eup %1407  ;;  %1409 = vtanh.f32 %v1784_v61 }
 0x632   :  { %375 = vrot.lane.b32.xlu1 %v1408_v63, %s1501_s29 }
 0x637   :  { %v1410_v0 = vpop.eup %1409 }
 0x638   :  { %414 = vrot.lane.b32.xlu0 %v1410_v0, %s1501_s29 }
 0x63a   :  { %433 = vrot.lane.b32.xlu1 %v1303_v52, %s1502_s18 }
 0x6a4   :  { %v376_v3 = vpop.permute.xlu1 %375 }
 0x6a5   :  { %v1793_v5 = vmul.f32 %v376_v3, %v359_v50 }
 0x6a7   :  { %v424_v48 = vpack.c.bf16 %v1793_v5, %v1793_v5 }
 0x6a9   :  { %426 = vrot.lane.b32.xlu0 %v424_v48, %s1504_s22 }
 0x6aa   :  { %v415_v6 = vpop.permute.xlu0 %414 }
 0x6ab   :  { %v417_v7 = vmul.f32 %v415_v6, %v398_v36 }
 0x6ac   :  { %v434_v10 = vpop.permute.xlu1 %433 }
 0x6ad   :  { %v418_v8 = vpack.c.bf16 %v417_v7, %v417_v7 }
 0x6af   :  { %420 = vrot.lane.b32.xlu2 %v418_v8, %s1502_s18 }
 0x709   :  { %v421_v9 = vpop.permute.xlu2 %420 }
 0x70a   :  { %423 = vst.msk [vmem:[#allocation2] sm:$0xf] %vm125_vm5, %v421_v9  ;;  %v380_v9 = vadd.f32 %v1793_v5, %v1753_v62 }
 0x71b   :  { %v427_v11 = vpop.permute.xlu0 %426 }
 0x71c   :  { %429 = vst.msk [vmem:[#allocation2] sm:$0xf] %vm127_vm6, %v427_v11 }
 0x71d   :  { %436 = vst.msk [vmem:[#allocation2] sm:$0xf] %vm135_vm7, %v434_v10 }
 0x724   :  { %v437_v12 = vld [vmem:[#allocation2] sm:$0xf] }
 0x725   :  { %1304 = vmatmul.msk.bf16.vlgmr.msrb.gmra.mxu1 %vm182_vm8, %v437_v12  ;;  %1305 = vmatmul.msk.bf16.vlgmr.msra.gmra.mxu2 %vm182_vm8, %v437_v12 }
 0x726   :  { %948 = vmatpush.bf16.msrb.mxu1 %v1577_v2  ;;  %961 = vmatpush.bf16.msra.mxu2 %v1608_v31 }
 0x72a   :  { %949 = vmatpush.bf16.msrb.mxu1 %v1619_v35  ;;  %962 = vmatpush.bf16.msra.mxu2 %v1631_v39 }
 0x72e   :  { %950 = vmatpush.bf16.msrb.mxu1 %v1635_v40  ;;  %963 = vmatpush.bf16.msra.mxu2 %v1645_v44 }
 0x732   :  { %951 = vmatpush.bf16.msrb.mxu1 %v1662_v51  ;;  %964 = vmatpush.bf16.msra.mxu2 %v1667_v53 }
 0x736   :  { %952 = vmatpush.bf16.msrb.mxu1 %v1682_v57  ;;  %965 = vmatpush.bf16.msra.mxu2 %v1687_v59 }
 0x7a2   :  { %v450_v13 = vpop.f32.mrf.mxu1 }
 0x7a3   :  { %v505_v2 = vadd.f32 %v1589_v4, %v450_v13 }
 0x7a5   :  { %1411 = vtanh.f32 %v505_v2  ;;  %v1307_v17 = vmul.f32 -1.442695, %v505_v2 }
 0x7a8   :  { %v463_v14 = vpop.f32.mrf.mxu2 }
 0x7a9   :  { %v467_v35 = vadd.f32 %v1732_v1, %v463_v14 }
 0x7aa   :  { %v452_v15 = vpop.f32.mrf.mxu1 }
 0x7ab   :  { %v1412_v16 = vpop.eup %1411  ;;  %1413 = vtanh.f32 %v467_v35  ;;  %v1306_v21 = vmul.f32 -1.442695, %v467_v35 }
 0x7ac   :  { %529 = vrot.lane.b32.xlu2 %v1412_v16, %s1501_s29  ;;  %1415 = vpow2.f32 %v1307_v17 }
 0x7b0   :  { %v465_v40 = vpop.f32.mrf.mxu2 }
 0x7b1   :  { %v1414_v51 = vpop.eup %1413 }
 0x7b2   :  { %490 = vrot.lane.b32.xlu0 %v1414_v51, %s1501_s29  ;;  %v1416_v57 = vpop.eup %1415 }
 0x7b3   :  { %v510_v18 = vadd.f32 1.0, %v1416_v57 }
 0x7b5   :  { %1417 = vrcp.f32 %v510_v18  ;;  %v522_v25 = vand.u32 2147483648, %v510_v18  ;;  %vm516_vm15 = vweird.f32 %v510_v18  ;;  %v520_v28 = vand.u32 2147483647, %v510_v18 }
 0x7b6   :  { %1419 = vpow2.f32 %v1306_v21 }
 0x7b7   :  { %v523_v32 = vor.u32 1.1754944e-38, %v522_v25  ;;  %vm521_vm2 = vcmp.eq.f32.partialorder %v520_v28, 8.507059e+37 }
 0x7bb   :  { %v1418_v19 = vpop.eup %1417 }
 0x7bc   :  { %v512_v20 = vmul.f32 %v1418_v19, %v510_v18  ;;  %vm517_vm14 = vweird.f32 %v1418_v19  ;;  %v1420_v27 = vpop.eup %1419 }
 0x7bd   :  { %vm518_vm1 = vmor %vm516_vm15, %vm517_vm14  ;;  %v471_v30 = vadd.f32 1.0, %v1420_v27 }
 0x7be   :  { %v513_v22 = vsub.f32 1.0, %v512_v20 }
 0x7bf   :  { %1421 = vrcp.f32 %v471_v30  ;;  %v483_v45 = vand.u32 2147483648, %v471_v30  ;;  %vm477_vm4 = vweird.f32 %v471_v30  ;;  %v481_v46 = vand.u32 2147483647, %v471_v30 }
 0x7c0   :  { %v514_v23 = vmul.f32 %v1418_v19, %v513_v22 }
 0x7c1   :  { %v484_v49 = vor.u32 1.1754944e-38, %v483_v45  ;;  %vm482_vm10 = vcmp.eq.f32.partialorder %v481_v46, 8.507059e+37 }
 0x7c2   :  { %v515_v24 = vadd.f32 %v1418_v19, %v514_v23 }
 0x7c4   :  { %v519_v29 = vsel %vm518_vm1, %v1418_v19, %v515_v24 }
 0x7c5   :  { %v524_v34 = vsel %vm521_vm2, %v523_v32, %v519_v29  ;;  %v1422_v37 = vpop.eup %1421 }
 0x7c6   :  { %v473_v38 = vmul.f32 %v1422_v37, %v471_v30  ;;  %vm478_vm3 = vweird.f32 %v1422_v37  ;;  %v527_v26 = vmul.f32 %v524_v34, %v1784_v61  ;;  %v1308_v61 = vld [vmem:[%s2008_s0 + $0x10] sm:$0xf] }
 0x7c7   :  { %vm479_vm9 = vmor %vm477_vm4, %vm478_vm3 }
 0x7c8   :  { %v474_v41 = vsub.f32 1.0, %v473_v38 }
 0x7ca   :  { %v475_v42 = vmul.f32 %v1422_v37, %v474_v41 }
 0x7cc   :  { %v476_v43 = vadd.f32 %v1422_v37, %v475_v42 }
 0x7ce   :  { %v480_v47 = vsel %vm479_vm9, %v1422_v37, %v476_v43 }
 0x7cf   :  { %v485_v54 = vsel %vm482_vm10, %v484_v49, %v480_v47 }
 0x7d0   :  { %v488_v63 = vmul.f32 %v485_v54, %v1780_v56 }
 0x806   :  { %v530_v33 = vpop.permute.xlu2 %529 }
 0x807   :  { %v532_v36 = vmul.f32 %v530_v33, %v524_v34 }
 0x809   :  { %534 = vrot.lane.b32.xlu1 %v532_v36, %s1501_s29 }
 0x824   :  { %v491_v50 = vpop.permute.xlu0 %490 }
 0x825   :  { %v493_v55 = vmul.f32 %v491_v50, %v485_v54 }
 0x827   :  { %495 = vrot.lane.b32.xlu2 %v493_v55, %s1501_s29 }
 0x87b   :  { %v535_v58 = vpop.permute.xlu1 %534 }
 0x87c   :  { %v1821_v60 = vadd.f32 %v535_v58, %v527_v26 }
 0x87e   :  { %1423 = vtanh.f32 %v1821_v60 }
 0x881   :  { %v496_v0 = vpop.permute.xlu2 %495 }
 0x882   :  { %v1825_v52 = vadd.f32 %v496_v0, %v488_v63 }
 0x884   :  { %v1424_v3 = vpop.eup %1423  ;;  %1425 = vtanh.f32 %v1825_v52 }
 0x885   :  { %540 = vrot.lane.b32.xlu0 %v1424_v3, %s1501_s29 }
 0x88a   :  { %v1426_v48 = vpop.eup %1425 }
 0x88b   :  { %501 = vrot.lane.b32.xlu1 %v1426_v48, %s1501_s29 }
 0x893   :  { %559 = vrot.lane.b32.xlu1 %v1308_v61, %s1502_s18 }
 0x8f7   :  { %v541_v6 = vpop.permute.xlu0 %540 }
 0x8f8   :  { %v543_v7 = vmul.f32 %v541_v6, %v524_v34 }
 0x8fa   :  { %v544_v56 = vpack.c.bf16 %v543_v7, %v543_v7 }
 0x8fc   :  { %546 = vrot.lane.b32.xlu2 %v544_v56, %s1502_s18 }
 0x8fd   :  { %v502_v8 = vpop.permute.xlu1 %501 }
 0x8fe   :  { %v504_v10 = vmul.f32 %v502_v8, %v485_v54 }
 0x900   :  { %v1837_v11 = vadd.f32 %v504_v10, %v380_v9  ;;  %v550_v12 = vpack.c.bf16 %v504_v10, %v504_v10 }
 0x902   :  { %552 = vrot.lane.b32.xlu0 %v550_v12, %s1504_s22 }
 0x905   :  { %v560_v2 = vpop.permute.xlu1 %559 }
 0x956   :  { %v547_v13 = vpop.permute.xlu2 %546 }
 0x957   :  { %549 = vst.msk [vmem:[#allocation2] sm:$0xf] %vm125_vm5, %v547_v13  ;;  %v1883_v13 = vld [vmem:[%s2009_s3] ss:$0 sm:$0xff] }
 0x974   :  { %v553_v14 = vpop.permute.xlu0 %552 }
 0x975   :  { %555 = vst.msk [vmem:[#allocation2] sm:$0xf] %vm127_vm6, %v553_v14 }
 0x976   :  { %562 = vst.msk [vmem:[#allocation2] sm:$0xf] %vm135_vm7, %v560_v2 }
 0x97d   :  { %v563_v35 = vld [vmem:[#allocation2] sm:$0xf] }
 0x97e   :  { %1309 = vmatmul.msk.bf16.vlgmr.msrb.gmra.mxu3 %vm182_vm8, %v563_v35  ;;  %1310 = vmatmul.msk.bf16.vlgmr.msrb.gmra.mxu0 %vm182_vm8, %v563_v35 }
 0x97f   :  { %1074 = vmatpush.bf16.msrb.mxu3 %v1608_v31 }
 0x983   :  { %1075 = vmatpush.bf16.msrb.mxu3 %v1631_v39 }
 0x987   :  { %1076 = vmatpush.bf16.msrb.mxu3 %v1645_v44 }
 0x98b   :  { %1077 = vmatpush.bf16.msrb.mxu3 %v1667_v53 }
 0x98f   :  { %1078 = vmatpush.bf16.msrb.mxu3 %v1687_v59 }
 0x9fb   :  { %v589_v62 = vpop.f32.mrf.mxu0 }
 0x9fc   :  { %v593_v5 = vadd.f32 %v1732_v1, %v589_v62 }
 0x9fe   :  { %1427 = vtanh.f32 %v593_v5  ;;  %v1311_v17 = vmul.f32 -1.442695, %v593_v5 }
 0xa01   :  { %v576_v15 = vpop.f32.mrf.mxu3 }
 0xa02   :  { %v631_v16 = vadd.f32 %v1589_v4, %v576_v15 }
 0xa03   :  { %v591_v40 = vpop.f32.mrf.mxu0 }
 0xa04   :  { %v1428_v51 = vpop.eup %1427  ;;  %1429 = vtanh.f32 %v631_v16  ;;  %v1312_v44 = vmul.f32 -1.442695, %v631_v16 }
 0xa05   :  { %616 = vrot.lane.b32.xlu0 %v1428_v51, %s1501_s29 }
 0xa06   :  { %1431 = vpow2.f32 %v1312_v44 }
 0xa09   :  { %v578_v31 = vpop.f32.mrf.mxu3 }
 0xa0a   :  { %v1430_v39 = vpop.eup %1429 }
 0xa0b   :  { %655 = vrot.lane.b32.xlu2 %v1430_v39, %s1501_s29 }
 0xa0c   :  { %v1432_v53 = vpop.eup %1431 }
 0xa0d   :  { %v636_v59 = vadd.f32 1.0, %v1432_v53 }
 0xa0f   :  { %1433 = vrcp.f32 %v636_v59  ;;  %v648_v23 = vand.u32 2147483648, %v636_v59  ;;  %vm642_vm12 = vweird.f32 %v636_v59  ;;  %v646_v24 = vand.u32 2147483647, %v636_v59 }
 0xa10   :  { %1435 = vpow2.f32 %v1311_v17 }
 0xa11   :  { %v649_v28 = vor.u32 1.1754944e-38, %v648_v23  ;;  %vm647_vm14 = vcmp.eq.f32.partialorder %v646_v24, 8.507059e+37 }
 0xa15   :  { %v1434_v57 = vpop.eup %1433 }
 0xa16   :  { %v638_v18 = vmul.f32 %v1434_v57, %v636_v59  ;;  %v1436_v19 = vpop.eup %1435  ;;  %vm643_vm11 = vweird.f32 %v1434_v57 }
 0xa17   :  { %v597_v20 = vadd.f32 1.0, %v1436_v19  ;;  %vm644_vm13 = vmor %vm642_vm12, %vm643_vm11 }
 0xa18   :  { %v639_v4 = vsub.f32 1.0, %v638_v18 }
 0xa19   :  { %1437 = vrcp.f32 %v597_v20  ;;  %v609_v38 = vand.u32 2147483648, %v597_v20  ;;  %vm603_vm1 = vweird.f32 %v597_v20  ;;  %v607_v41 = vand.u32 2147483647, %v597_v20 }
 0xa1a   :  { %v640_v21 = vmul.f32 %v1434_v57, %v639_v4 }
 0xa1b   :  { %v610_v43 = vor.u32 1.1754944e-38, %v609_v38  ;;  %vm608_vm3 = vcmp.eq.f32.partialorder %v607_v41, 8.507059e+37 }
 0xa1c   :  { %v641_v22 = vadd.f32 %v1434_v57, %v640_v21 }
 0xa1e   :  { %v645_v27 = vsel %vm644_vm13, %v1434_v57, %v641_v22 }
 0xa1f   :  { %v1438_v25 = vpop.eup %1437  ;;  %v650_v32 = vsel %vm647_vm14, %v649_v28, %v645_v27 }
 0xa20   :  { %v599_v29 = vmul.f32 %v1438_v25, %v597_v20  ;;  %vm604_vm15 = vweird.f32 %v1438_v25  ;;  %v653_v55 = vmul.f32 %v650_v32, %v1821_v60 }
 0xa21   :  { %vm605_vm2 = vmor %vm603_vm1, %vm604_vm15 }
 0xa22   :  { %v600_v34 = vsub.f32 1.0, %v599_v29 }
 0xa24   :  { %v601_v36 = vmul.f32 %v1438_v25, %v600_v34 }
 0xa26   :  { %v602_v37 = vadd.f32 %v1438_v25, %v601_v36 }
 0xa28   :  { %v606_v42 = vsel %vm605_vm2, %v1438_v25, %v602_v37 }
 0xa29   :  { %v611_v46 = vsel %vm608_vm3, %v610_v43, %v606_v42 }
 0xa2a   :  { %v614_v49 = vmul.f32 %v611_v46, %v1825_v52  ;;  %v1313_v52 = vld [vmem:[%s2008_s0 + $0x14] sm:$0xf] }
 0xa65   :  { %v656_v30 = vpop.permute.xlu2 %655 }
 0xa66   :  { %v658_v33 = vmul.f32 %v656_v30, %v650_v32 }
 0xa68   :  { %660 = vrot.lane.b32.xlu1 %v658_v33, %s1501_s29 }
 0xa77   :  { %v617_v45 = vpop.permute.xlu0 %616 }
 0xa78   :  { %v619_v47 = vmul.f32 %v617_v45, %v611_v46 }
 0xa7a   :  { %621 = vrot.lane.b32.xlu2 %v619_v47, %s1501_s29 }
 0xad4   :  { %v622_v50 = vpop.permute.xlu2 %621 }
 0xad5   :  { %v1857_v54 = vadd.f32 %v622_v50, %v614_v49 }
 0xad7   :  { %1439 = vtanh.f32 %v1857_v54 }
 0xada   :  { %v661_v26 = vpop.permute.xlu1 %660 }
 0xadb   :  { %v1861_v58 = vadd.f32 %v661_v26, %v653_v55 }
 0xadd   :  { %v1440_v63 = vpop.eup %1439  ;;  %1441 = vtanh.f32 %v1861_v58 }
 0xade   :  { %627 = vrot.lane.b32.xlu1 %v1440_v63, %s1501_s29 }
 0xae3   :  { %v1442_v0 = vpop.eup %1441 }
 0xae4   :  { %666 = vrot.lane.b32.xlu0 %v1442_v0, %s1501_s29 }
 0xae6   :  { %685 = vrot.lane.b32.xlu1 %v1313_v52, %s1502_s18 }
 0xb50   :  { %v628_v3 = vpop.permute.xlu1 %627 }
 0xb51   :  { %v630_v48 = vmul.f32 %v628_v3, %v611_v46 }
 0xb53   :  { %v1871_v60 = vadd.f32 %v630_v48, %v1837_v11  ;;  %v676_v61 = vpack.c.bf16 %v630_v48, %v630_v48 }
 0xb55   :  { %678 = vrot.lane.b32.xlu0 %v676_v61, %s1504_s22 }
 0xb56   :  { %v667_v6 = vpop.permute.xlu0 %666 }
 0xb57   :  { %v669_v7 = vmul.f32 %v667_v6, %v650_v32 }
 0xb58   :  { %v686_v9 = vpop.permute.xlu1 %685 }
 0xb59   :  { %v670_v56 = vpack.c.bf16 %v669_v7, %v669_v7 }
 0xb5b   :  { %672 = vrot.lane.b32.xlu2 %v670_v56, %s1502_s18 }
 0xbb5   :  { %v673_v8 = vpop.permute.xlu2 %672 }
 0xbb6   :  { %675 = vst.msk [vmem:[#allocation2] sm:$0xf] %vm125_vm5, %v673_v8 }
 0xbc7   :  { %v679_v10 = vpop.permute.xlu0 %678 }
 0xbc8   :  { %681 = vst.msk [vmem:[#allocation2] sm:$0xf] %vm127_vm6, %v679_v10 }
 0xbc9   :  { %688 = vst.msk [vmem:[#allocation2] sm:$0xf] %vm135_vm7, %v686_v9 }
 0xbd0   :  { %v689_v12 = vld [vmem:[#allocation2] sm:$0xf] }
 0xbd1   :  { %1314 = vmatmul.msk.bf16.vlgmr.msra.gmra.mxu1 %vm182_vm8, %v689_v12  ;;  %1315 = vmatmul.msk.bf16.vlgmr.msrb.gmra.mxu2 %vm182_vm8, %v689_v12 }
 0xc4e   :  { %v702_v11 = vpop.f32.mrf.mxu1 }
 0xc4f   :  { %v757_v2 = vadd.f32 %v1883_v13, %v702_v11 }
 0xc51   :  { %1443 = vtanh.f32 %v757_v2  ;;  %v1317_v40 = vmul.f32 -1.442695, %v757_v2 }
 0xc54   :  { %v715_v14 = vpop.f32.mrf.mxu2 }
 0xc55   :  { %v719_v35 = vadd.f32 %v1732_v1, %v715_v14 }
 0xc56   :  { %v704_v62 = vpop.f32.mrf.mxu1 }
 0xc57   :  { %v1444_v5 = vpop.eup %1443  ;;  %1445 = vtanh.f32 %v719_v35  ;;  %v1316_v53 = vmul.f32 -1.442695, %v719_v35 }
 0xc58   :  { %781 = vrot.lane.b32.xlu2 %v1444_v5, %s1501_s29  ;;  %1447 = vpow2.f32 %v1317_v40 }
 0xc5c   :  { %v717_v15 = vpop.f32.mrf.mxu2 }
 0xc5d   :  { %v1446_v16 = vpop.eup %1445 }
 0xc5e   :  { %742 = vrot.lane.b32.xlu0 %v1446_v16, %s1501_s29  ;;  %v1448_v51 = vpop.eup %1447 }
 0xc5f   :  { %v762_v31 = vadd.f32 1.0, %v1448_v51 }
 0xc61   :  { %1449 = vrcp.f32 %v762_v31  ;;  %v774_v18 = vand.u32 2147483648, %v762_v31  ;;  %vm768_vm9 = vweird.f32 %v762_v31  ;;  %v772_v4 = vand.u32 2147483647, %v762_v31 }
 0xc62   :  { %1451 = vpow2.f32 %v1316_v53 }
 0xc63   :  { %v775_v22 = vor.u32 1.1754944e-38, %v774_v18  ;;  %vm773_vm11 = vcmp.eq.f32.partialorder %v772_v4, 8.507059e+37 }
 0xc67   :  { %v1450_v39 = vpop.eup %1449 }
 0xc68   :  { %v764_v44 = vmul.f32 %v1450_v39, %v762_v31  ;;  %vm769_vm4 = vweird.f32 %v1450_v39  ;;  %v1452_v19 = vpop.eup %1451 }
 0xc69   :  { %vm770_vm10 = vmor %vm768_vm9, %vm769_vm4  ;;  %v723_v21 = vadd.f32 1.0, %v1452_v19 }
 0xc6a   :  { %v765_v59 = vsub.f32 1.0, %v764_v44 }
 0xc6b   :  { %1453 = vrcp.f32 %v723_v21  ;;  %v735_v33 = vand.u32 2147483648, %v723_v21  ;;  %vm729_vm13 = vweird.f32 %v723_v21  ;;  %v733_v34 = vand.u32 2147483647, %v723_v21 }
 0xc6c   :  { %v766_v17 = vmul.f32 %v1450_v39, %v765_v59 }
 0xc6d   :  { %v736_v37 = vor.u32 1.1754944e-38, %v735_v33  ;;  %vm734_vm15 = vcmp.eq.f32.partialorder %v733_v34, 8.507059e+37 }
 0xc6e   :  { %v767_v57 = vadd.f32 %v1450_v39, %v766_v17 }
 0xc70   :  { %v771_v20 = vsel %vm770_vm10, %v1450_v39, %v767_v57 }
 0xc71   :  { %v776_v24 = vsel %vm773_vm11, %v775_v22, %v771_v20  ;;  %v1454_v27 = vpop.eup %1453 }
 0xc72   :  { %v725_v28 = vmul.f32 %v1454_v27, %v723_v21  ;;  %vm730_vm12 = vweird.f32 %v1454_v27  ;;  %v779_v43 = vmul.f32 %v776_v24, %v1861_v58  ;;  %v1318_v58 = vld [vmem:[%s2008_s0 + $0x18] sm:$0xf] }
 0xc73   :  { %vm731_vm14 = vmor %vm729_vm13, %vm730_vm12 }
 0xc74   :  { %v726_v29 = vsub.f32 1.0, %v725_v28 }
 0xc76   :  { %v727_v30 = vmul.f32 %v1454_v27, %v726_v29 }
 0xc78   :  { %v728_v32 = vadd.f32 %v1454_v27, %v727_v30 }
 0xc7a   :  { %v732_v36 = vsel %vm731_vm14, %v1454_v27, %v728_v32 }
 0xc7b   :  { %v737_v41 = vsel %vm734_vm15, %v736_v37, %v732_v36 }
 0xc7c   :  { %v740_v47 = vmul.f32 %v737_v41, %v1857_v54 }
 0xcb2   :  { %v782_v23 = vpop.permute.xlu2 %781 }
 0xcb3   :  { %v784_v25 = vmul.f32 %v782_v23, %v776_v24 }
 0xcb5   :  { %786 = vrot.lane.b32.xlu1 %v784_v25, %s1501_s29 }
 0xcd0   :  { %v743_v38 = vpop.permute.xlu0 %742 }
 0xcd1   :  { %v745_v42 = vmul.f32 %v743_v38, %v737_v41 }
 0xcd3   :  { %747 = vrot.lane.b32.xlu2 %v745_v42, %s1501_s29 }
 0xd27   :  { %v787_v45 = vpop.permute.xlu1 %786 }
 0xd28   :  { %v1892_v46 = vadd.f32 %v787_v45, %v779_v43 }
 0xd2a   :  { %1455 = vtanh.f32 %v1892_v46 }
 0xd2d   :  { %v748_v49 = vpop.permute.xlu2 %747 }
 0xd2e   :  { %v1896_v50 = vadd.f32 %v748_v49, %v740_v47  ;;  %v1323_v49 = vld [vmem:[%s2008_s0 + $0x1c] sm:$0xf] }
 0xd30   :  { %v1456_v55 = vpop.eup %1455  ;;  %1457 = vtanh.f32 %v1896_v50 }
 0xd31   :  { %792 = vrot.lane.b32.xlu0 %v1456_v55, %s1501_s29 }
 0xd36   :  { %v1458_v26 = vpop.eup %1457 }
 0xd37   :  { %753 = vrot.lane.b32.xlu1 %v1458_v26, %s1501_s29 }
 0xd3f   :  { %811 = vrot.lane.b32.xlu1 %v1318_v58, %s1502_s18 }
 0xda3   :  { %v793_v63 = vpop.permute.xlu0 %792 }
 0xda4   :  { %v795_v0 = vmul.f32 %v793_v63, %v776_v24 }
 0xda6   :  { %v796_v54 = vpack.c.bf16 %v795_v0, %v795_v0 }
 0xda8   :  { %798 = vrot.lane.b32.xlu2 %v796_v54, %s1502_s18 }
 0xda9   :  { %v754_v52 = vpop.permute.xlu1 %753 }
 0xdaa   :  { %v756_v3 = vmul.f32 %v754_v52, %v737_v41 }
 0xdac   :  { %v1907_v48 = vadd.f32 %v756_v3, %v1871_v60  ;;  %v802_v61 = vpack.c.bf16 %v756_v3, %v756_v3 }
 0xdae   :  { %804 = vrot.lane.b32.xlu0 %v802_v61, %s1504_s22 }
 0xdb1   :  { %v812_v7 = vpop.permute.xlu1 %811 }
 0xe02   :  { %v799_v6 = vpop.permute.xlu2 %798 }
 0xe03   :  { %801 = vst.msk [vmem:[#allocation2] sm:$0xf] %vm125_vm5, %v799_v6 }
 0xe20   :  { %v805_v56 = vpop.permute.xlu0 %804 }
 0xe21   :  { %807 = vst.msk [vmem:[#allocation2] sm:$0xf] %vm127_vm6, %v805_v56  ;;  %v1949_v56 = vld [vmem:[%s2010_s4] ss:$0 sm:$0xff] }
 0xe22   :  { %814 = vst.msk [vmem:[#allocation2] sm:$0xf] %vm135_vm7, %v812_v7 }
 0xe29   :  { %v815_v8 = vld [vmem:[#allocation2] sm:$0xf] }
 0xe2a   :  { %1319 = vmatmul.msk.bf16.vlgmr.msra.gmra.mxu3 %vm182_vm8, %v815_v8  ;;  %1320 = vmatmul.msk.bf16.vlgmr.msra.gmra.mxu0 %vm182_vm8, %v815_v8 }
 0xea7   :  { %v841_v9 = vpop.f32.mrf.mxu0 }
 0xea8   :  { %v845_v60 = vadd.f32 %v1732_v1, %v841_v9 }
 0xeaa   :  { %1459 = vtanh.f32 %v845_v60  ;;  %v1321_v16 = vmul.f32 -1.442695, %v845_v60 }
 0xead   :  { %v828_v10 = vpop.f32.mrf.mxu3 }
 0xeae   :  { %v883_v12 = vadd.f32 %v1883_v13, %v828_v10 }
 0xeaf   :  { %v843_v11 = vpop.f32.mrf.mxu0 }
 0xeb0   :  { %v1460_v2 = vpop.eup %1459  ;;  %1461 = vtanh.f32 %v883_v12  ;;  %v1322_v62 = vmul.f32 -1.442695, %v883_v12 }
 0xeb1   :  { %868 = vrot.lane.b32.xlu0 %v1460_v2, %s1501_s29 }
 0xeb2   :  { %1463 = vpow2.f32 %v1322_v62 }
 0xeb5   :  { %v830_v14 = vpop.f32.mrf.mxu3 }
 0xeb6   :  { %v1462_v35 = vpop.eup %1461 }
 0xeb7   :  { %907 = vrot.lane.b32.xlu2 %v1462_v35, %s1501_s29 }
 0xeb8   :  { %v1464_v5 = vpop.eup %1463 }
 0xeb9   :  { %v888_v15 = vadd.f32 1.0, %v1464_v5 }
 0xebb   :  { %1465 = vrcp.f32 %v888_v15  ;;  %v900_v59 = vand.u32 2147483648, %v888_v15  ;;  %vm894_vm2 = vweird.f32 %v888_v15  ;;  %v898_v17 = vand.u32 2147483647, %v888_v15 }
 0xebc   :  { %1467 = vpow2.f32 %v1321_v16 }
 0xebd   :  { %v901_v19 = vor.u32 1.1754944e-38, %v900_v59  ;;  %vm899_vm4 = vcmp.eq.f32.partialorder %v898_v17, 8.507059e+37 }
 0xec1   :  { %v1466_v1 = vpop.eup %1465 }
 0xec2   :  { %v890_v40 = vmul.f32 %v1466_v1, %v888_v15  ;;  %v1468_v51 = vpop.eup %1467  ;;  %vm895_vm1 = vweird.f32 %v1466_v1 }
 0xec3   :  { %v849_v39 = vadd.f32 1.0, %v1468_v51  ;;  %vm896_vm3 = vmor %vm894_vm2, %vm895_vm1 }
 0xec4   :  { %v891_v31 = vsub.f32 1.0, %v890_v40 }
 0xec5   :  { %1469 = vrcp.f32 %v849_v39  ;;  %v861_v27 = vand.u32 2147483648, %v849_v39  ;;  %vm855_vm10 = vweird.f32 %v849_v39  ;;  %v859_v28 = vand.u32 2147483647, %v849_v39 }
 0xec6   :  { %v892_v44 = vmul.f32 %v1466_v1, %v891_v31 }
 0xec7   :  { %v862_v30 = vor.u32 1.1754944e-38, %v861_v27  ;;  %vm860_vm12 = vcmp.eq.f32.partialorder %v859_v28, 8.507059e+37 }
 0xec8   :  { %v893_v53 = vadd.f32 %v1466_v1, %v892_v44 }
 0xeca   :  { %v897_v18 = vsel %vm896_vm3, %v1466_v1, %v893_v53 }
 0xecb   :  { %v1470_v57 = vpop.eup %1469  ;;  %v902_v21 = vsel %vm899_vm4, %v901_v19, %v897_v18 }
 0xecc   :  { %v851_v4 = vmul.f32 %v1470_v57, %v849_v39  ;;  %vm856_vm9 = vweird.f32 %v1470_v57  ;;  %v905_v41 = vmul.f32 %v902_v21, %v1892_v46 }
 0xecd   :  { %vm857_vm11 = vmor %vm855_vm10, %vm856_vm9  ;;  %vm1155_vm10 = vcmask 261120  }
 0xece   :  { %v852_v23 = vsub.f32 1.0, %v851_v4 }
 0xed0   :  { %v853_v24 = vmul.f32 %v1470_v57, %v852_v23 }
 0xed2   :  { %v854_v25 = vadd.f32 %v1470_v57, %v853_v24 }
 0xed4   :  { %v858_v29 = vsel %vm857_vm11, %v1470_v57, %v854_v25  ;;  %vm1222_vm11 = vcmask 1043456  }
 0xed5   :  { %v863_v33 = vsel %vm860_vm12, %v862_v30, %v858_v29 }
 0xed6   :  { %v866_v36 = vmul.f32 %v863_v33, %v1896_v50 }
 0xf11   :  { %v908_v20 = vpop.permute.xlu2 %907 }
 0xf12   :  { %v910_v22 = vmul.f32 %v908_v20, %v902_v21 }
 0xf14   :  { %912 = vrot.lane.b32.xlu1 %v910_v22, %s1501_s29 }
 0xf23   :  { %v869_v32 = vpop.permute.xlu0 %868 }
 0xf24   :  { %v871_v34 = vmul.f32 %v869_v32, %v863_v33 }
 0xf26   :  { %873 = vrot.lane.b32.xlu2 %v871_v34, %s1501_s29 }
 0xf80   :  { %v874_v37 = vpop.permute.xlu2 %873 }
 0xf81   :  { %v1922_v38 = vadd.f32 %v874_v37, %v866_v36 }
 0xf83   :  { %1471 = vtanh.f32 %v1922_v38 }
 0xf86   :  { %v913_v42 = vpop.permute.xlu1 %912 }
 0xf87   :  { %v1926_v43 = vadd.f32 %v913_v42, %v905_v41  ;;  %v1328_v42 = vld [vmem:[%s2008_s0 + $0x20] sm:$0xf] }
 0xf89   :  { %v1472_v45 = vpop.eup %1471  ;;  %1473 = vtanh.f32 %v1926_v43 }
 0xf8a   :  { %879 = vrot.lane.b32.xlu1 %v1472_v45, %s1501_s29 }
 0xf8f   :  { %v1474_v47 = vpop.eup %1473 }
 0xf90   :  { %918 = vrot.lane.b32.xlu0 %v1474_v47, %s1501_s29 }
 0xf92   :  { %937 = vrot.lane.b32.xlu1 %v1323_v49, %s1502_s18 }
 0xffc   :  { %v880_v50 = vpop.permute.xlu1 %879 }
 0xffd   :  { %v882_v55 = vmul.f32 %v880_v50, %v863_v33 }
 0xfff   :  { %v1936_v46 = vadd.f32 %v882_v55, %v1907_v48  ;;  %v928_v26 = vpack.c.bf16 %v882_v55, %v882_v55 }
0x1001   :  { %930 = vrot.lane.b32.xlu0 %v928_v26, %s1504_s22 }
0x1002   :  { %v919_v58 = vpop.permute.xlu0 %918 }
0x1003   :  { %v921_v63 = vmul.f32 %v919_v58, %v902_v21 }
0x1004   :  { %v938_v52 = vpop.permute.xlu1 %937 }
0x1005   :  { %v922_v0 = vpack.c.bf16 %v921_v63, %v921_v63 }
0x1007   :  { %924 = vrot.lane.b32.xlu2 %v922_v0, %s1502_s18 }
0x1061   :  { %v925_v54 = vpop.permute.xlu2 %924 }
0x1062   :  { %927 = vst.msk [vmem:[#allocation2] sm:$0xf] %vm125_vm5, %v925_v54 }
0x1073   :  { %v931_v3 = vpop.permute.xlu0 %930 }
0x1074   :  { %933 = vst.msk [vmem:[#allocation2] sm:$0xf] %vm127_vm6, %v931_v3 }
0x1075   :  { %940 = vst.msk [vmem:[#allocation2] sm:$0xf] %vm135_vm7, %v938_v52 }
0x107c   :  { %v941_v61 = vld [vmem:[#allocation2] sm:$0xf] }
0x107d   :  { %1324 = vmatmul.msk.bf16.vlgmr.msrb.gmra.mxu1 %vm182_vm8, %v941_v61  ;;  %1325 = vmatmul.msk.bf16.vlgmr.msra.gmra.mxu2 %vm182_vm8, %v941_v61 }
0x10fa   :  { %v954_v48 = vpop.f32.mrf.mxu1 }
0x10fb   :  { %v1009_v6 = vadd.f32 %v1883_v13, %v954_v48 }
0x10fd   :  { %1475 = vtanh.f32 %v1009_v6  ;;  %v1327_v11 = vmul.f32 -1.442695, %v1009_v6 }
0x1100   :  { %v967_v7 = vpop.f32.mrf.mxu2 }
0x1101   :  { %v971_v8 = vadd.f32 %v1949_v56, %v967_v7 }
0x1102   :  { %v956_v9 = vpop.f32.mrf.mxu1 }
0x1103   :  { %v1476_v60 = vpop.eup %1475  ;;  %1477 = vtanh.f32 %v971_v8  ;;  %v1326_v62 = vmul.f32 -1.442695, %v971_v8 }
0x1104   :  { %1033 = vrot.lane.b32.xlu2 %v1476_v60, %s1501_s29  ;;  %1479 = vpow2.f32 %v1327_v11 }
0x1108   :  { %v969_v10 = vpop.f32.mrf.mxu2 }
0x1109   :  { %v1478_v12 = vpop.eup %1477 }
0x110a   :  { %994 = vrot.lane.b32.xlu0 %v1478_v12, %s1501_s29  ;;  %v1480_v13 = vpop.eup %1479 }
0x110b   :  { %v1014_v2 = vadd.f32 1.0, %v1480_v13 }
0x110d   :  { %1481 = vrcp.f32 %v1014_v2  ;;  %v1026_v1 = vand.u32 2147483648, %v1014_v2  ;;  %vm1020_vm14 = vweird.f32 %v1014_v2  ;;  %v1024_v51 = vand.u32 2147483647, %v1014_v2 }
0x110e   :  { %1483 = vpow2.f32 %v1326_v62 }
0x110f   :  { %v1027_v44 = vor.u32 1.1754944e-38, %v1026_v1  ;;  %vm1025_vm1 = vcmp.eq.f32.partialorder %v1024_v51, 8.507059e+37  ;;  %v1357_v1 = vld [vmem:[%s2012_s5 + $0x8] sm:$0xff] }
0x1110   :  { %1165 = vmatpush.bf16.msrb.mxu0 %v1357_v1 }
0x1113   :  { %v1482_v14 = vpop.eup %1481 }
0x1114   :  { %v1016_v35 = vmul.f32 %v1482_v14, %v1014_v2  ;;  %vm1021_vm13 = vweird.f32 %v1482_v14  ;;  %v1484_v40 = vpop.eup %1483 }
0x1115   :  { %vm1022_vm15 = vmor %vm1020_vm14, %vm1021_vm13  ;;  %v975_v39 = vadd.f32 1.0, %v1484_v40  ;;  %v1356_v40 = vld [vmem:[%s2012_s5] sm:$0xff]  ;;  %vm1218_vm14 = vcmask 64512  }
0x1116   :  { %v1017_v5 = vsub.f32 1.0, %v1016_v35  ;;  %1166 = vmatpush.bf16.msrb.mxu0 %v1356_v40 }
0x1117   :  { %1485 = vrcp.f32 %v975_v39  ;;  %v987_v21 = vand.u32 2147483648, %v975_v39  ;;  %vm981_vm3 = vweird.f32 %v975_v39  ;;  %v985_v22 = vand.u32 2147483647, %v975_v39 }
0x1118   :  { %v1018_v15 = vmul.f32 %v1482_v14, %v1017_v5 }
0x1119   :  { %v988_v24 = vor.u32 1.1754944e-38, %v987_v21  ;;  %vm986_vm9 = vcmp.eq.f32.partialorder %v985_v22, 8.507059e+37  ;;  %v1368_v22 = vld [vmem:[%s2013_s7] ss:$0 sm:$0xff]  ;;  %s1505_s7 = smov 8  }
0x111a   :  { %v1019_v16 = vadd.f32 %v1482_v14, %v1018_v15 }
0x111c   :  { %v1023_v31 = vsel %vm1022_vm15, %v1482_v14, %v1019_v16 }
0x111d   :  { %v1028_v59 = vsel %vm1025_vm1, %v1027_v44, %v1023_v31  ;;  %v1486_v57 = vpop.eup %1485 }
0x111e   :  { %v977_v18 = vmul.f32 %v1486_v57, %v975_v39  ;;  %vm982_vm2 = vweird.f32 %v1486_v57  ;;  %v1031_v29 = vmul.f32 %v1028_v59, %v1926_v43 }
0x111f   :  { %vm983_vm4 = vmor %vm981_vm3, %vm982_vm2 }
0x1120   :  { %v978_v19 = vsub.f32 1.0, %v977_v18  ;;  %v1213_v18 = vld [vmem:[%s2017_s10] sm:$0xf] }
0x1122   :  { %v979_v4 = vmul.f32 %v1486_v57, %v978_v19  ;;  %v1224_v19 = vsel %vm1222_vm11, %v1213_v18, 0 }
0x1123   :  { %1233 = vmatpush.bf16.msra.mxu1 %v1224_v19 }
0x1124   :  { %v980_v20 = vadd.f32 %v1486_v57, %v979_v4  ;;  %v1367_v4 = vld [vmem:[%s2011_s6] ss:$0 sm:$0xff] }
0x1126   :  { %v984_v23 = vsel %vm983_vm4, %v1486_v57, %v980_v20 }
0x1127   :  { %v989_v27 = vsel %vm986_vm9, %v988_v24, %v984_v23 }
0x1128   :  { %v992_v33 = vmul.f32 %v989_v27, %v1922_v38 }
0x115e   :  { %v1034_v53 = vpop.permute.xlu2 %1033 }
0x115f   :  { %v1036_v17 = vmul.f32 %v1034_v53, %v1028_v59 }
0x1161   :  { %1038 = vrot.lane.b32.xlu1 %v1036_v17, %s1501_s29  ;;  %v1358_v17 = vld [vmem:[%s2015_s8] sm:$0xff] }
0x1162   :  { %1203 = vmatpush.bf16.msra.mxu0 %v1358_v17 }
0x117c   :  { %v995_v25 = vpop.permute.xlu0 %994 }
0x117d   :  { %v997_v28 = vmul.f32 %v995_v25, %v989_v27 }
0x117f   :  { %999 = vrot.lane.b32.xlu2 %v997_v28, %s1501_s29 }
0x11d3   :  { %v1039_v30 = vpop.permute.xlu1 %1038 }
0x11d4   :  { %v1041_v32 = vadd.f32 %v1039_v30, %v1031_v29 }
0x11d6   :  { %1487 = vtanh.f32 %v1041_v32  ;;  %v17_v32 = vstv %s2018_s11 }
0x11d7   :  { %18 = vst [vmem:[#allocation3] sm:$0x1] %v17_v32 }
0x11d9   :  { %v1000_v34 = vpop.permute.xlu2 %999 }
0x11da   :  { %v1002_v36 = vadd.f32 %v1000_v34, %v992_v33  ;;  %v1369_v33 = vld [vmem:[%s2016_s9] ss:$0 sm:$0xff] }
0x11dc   :  { %v1488_v37 = vpop.eup %1487  ;;  %1489 = vtanh.f32 %v1002_v36 }
0x11dd   :  { %1044 = vrot.lane.b32.xlu0 %v1488_v37, %s1501_s29 }
0x11e2   :  { %v1490_v41 = vpop.eup %1489 }
0x11e3   :  { %1005 = vrot.lane.b32.xlu1 %v1490_v41, %s1501_s29 }
0x11eb   :  { %1063 = vrot.lane.b32.xlu1 %v1328_v42, %s1502_s18 }
0x124f   :  { %v1045_v43 = vpop.permute.xlu0 %1044 }
0x1250   :  { %v1047_v45 = vmul.f32 %v1045_v43, %v1028_v59  ;;  %v1124_v59 = vld [vmem:[%s2014_s1] sm:$0xff] }
0x1252   :  { %v1048_v47 = vpack.c.bf16 %v1047_v45, %v1047_v45  ;;  %v1370_v45 = vld [vmem:[#allocation3] ss:$0 sm:$0xff] }
0x1254   :  { %1050 = vrot.lane.b32.xlu2 %v1048_v47, %s1502_s18 }
0x1255   :  { %v1006_v38 = vpop.permute.xlu1 %1005 }
0x1256   :  { %v1008_v49 = vmul.f32 %v1006_v38, %v989_v27 }
0x1258   :  { %v1010_v50 = vadd.f32 %v1008_v49, %v1936_v46  ;;  %v1054_v55 = vpack.c.bf16 %v1008_v49, %v1008_v49 }
0x125a   :  { %1056 = vrot.lane.b32.xlu0 %v1054_v55, %s1504_s22 }
0x125d   :  { %v1064_v58 = vpop.permute.xlu1 %1063 }
0x12ae   :  { %v1051_v26 = vpop.permute.xlu2 %1050 }
0x12af   :  { %1053 = vst.msk [vmem:[#allocation2] sm:$0xf] %vm125_vm5, %v1051_v26 }
0x12cc   :  { %v1057_v63 = vpop.permute.xlu0 %1056 }
0x12cd   :  { %1059 = vst.msk [vmem:[#allocation2] sm:$0xf] %vm127_vm6, %v1057_v63 }
0x12ce   :  { %1066 = vst.msk [vmem:[#allocation2] sm:$0xf] %vm135_vm7, %v1064_v58 }
0x12d5   :  { %v1067_v0 = vld [vmem:[#allocation2] sm:$0xf] }
0x12d6   :  { %1329 = vmatmul.msk.bf16.vlgmr.msrb.gmra.mxu3 %vm182_vm8, %v1067_v0 }
0x1359   :  { %v1080_v54 = vpop.f32.mrf.mxu3 }
0x135a   :  { %v1084_v52 = vadd.f32 %v1949_v56, %v1080_v54 }
0x135c   :  { %1491 = vtanh.f32 %v1084_v52  ;;  %v1330_v61 = vmul.f32 -1.442695, %v1084_v52 }
0x135e   :  { %1493 = vpow2.f32 %v1330_v61 }
0x1361   :  { %v1082_v46 = vpop.f32.mrf.mxu3 }
0x1362   :  { %v1492_v3 = vpop.eup %1491 }
0x1363   :  { %1107 = vrot.lane.b32.xlu2 %v1492_v3, %s1501_s29 }
0x1364   :  { %v1494_v48 = vpop.eup %1493 }
0x1365   :  { %v1088_v6 = vadd.f32 1.0, %v1494_v48 }
0x1367   :  { %1495 = vrcp.f32 %v1088_v6  ;;  %v1100_v12 = vand.u32 2147483648, %v1088_v6  ;;  %vm1094_vm6 = vweird.f32 %v1088_v6  ;;  %v1098_v11 = vand.u32 2147483647, %v1088_v6 }
0x1369   :  { %v1101_v13 = vor.u32 1.1754944e-38, %v1100_v12  ;;  %vm1099_vm8 = vcmp.eq.f32.partialorder %v1098_v11, 8.507059e+37 }
0x136d   :  { %v1496_v7 = vpop.eup %1495 }
0x136e   :  { %v1090_v8 = vmul.f32 %v1496_v7, %v1088_v6  ;;  %vm1095_vm5 = vweird.f32 %v1496_v7 }
0x136f   :  { %vm1096_vm7 = vmor %vm1094_vm6, %vm1095_vm5 }
0x1370   :  { %v1091_v9 = vsub.f32 1.0, %v1090_v8 }
0x1372   :  { %v1092_v60 = vmul.f32 %v1496_v7, %v1091_v9 }
0x1374   :  { %v1093_v10 = vadd.f32 %v1496_v7, %v1092_v60 }
0x1376   :  { %v1097_v56 = vsel %vm1096_vm7, %v1496_v7, %v1093_v10 }
0x1377   :  { %v1102_v14 = vsel %vm1099_vm8, %v1101_v13, %v1097_v56 }
0x1378   :  { %v1105_v62 = vmul.f32 %v1102_v14, %v1002_v36 }
0x13bd   :  { %v1108_v2 = vpop.permute.xlu2 %1107 }
0x13be   :  { %v1110_v35 = vmul.f32 %v1108_v2, %v1102_v14 }
0x13c0   :  { %1112 = vrot.lane.b32.xlu0 %v1110_v35, %s1501_s29 }
0x13c8   :  { %1133 = vperm.xlu0 %1364, %v1124_v59  }
0x1432   :  { %v1113_v5 = vpop.permute.xlu0 %1112 }
0x1433   :  { %v1115_v15 = vadd.f32 %v1113_v5, %v1105_v62 }
0x1435   :  { %1497 = vtanh.f32 %v1115_v15 }
0x143a   :  { %v1134_v20 = vpop.permute.xlu0 %1133 }
0x143b   :  { %v1498_v16 = vpop.eup %1497  ;;  %v1139_v21 = vmul.f32 %v1367_v4, %v1134_v20 }
0x143c   :  { %1118 = vrot.lane.b32.xlu1 %v1498_v16, %s1501_s29 }
0x14ae   :  { %v1119_v51 = vpop.permute.xlu1 %1118 }
0x14af   :  { %v1121_v31 = vmul.f32 %v1119_v51, %v1102_v14 }
0x14b1   :  { %v1122_v39 = vadd.f32 %v1121_v31, %v1010_v50 }
0x14b3   :  { %v1123_v44 = vmul.f32 0.125, %v1122_v39 }
0x14b5   :  { %v1125_v53 = vpack.c.bf16 %v1123_v44, %v1123_v44 }
0x14b7   :  { %1141 = vrot.lane.b32.xlu2 %v1125_v53, %s1502_s18 }
0x1511   :  { %v1142_v57 = vpop.permute.xlu2 %1141 }
0x1512   :  { %1339 = vmatmul.msk.bf16.vlgmr.msrb.gmra.mxu0 %vm1155_vm10, %v1142_v57 }
0x158f   :  { %v1168_v23 = vpop.f32.mrf.mxu0 }
0x1590   :  { %v1169_v24 = vadd.f32 %v1168_v23, %v1139_v21 }
0x1592   :  { %v1176_v25 = vadd.f32 %v1368_v22, %v1169_v24 }
0x1594   :  { %vm1177_vm12 = vcmp.gt.f32.partialorder %v1176_v25, 0.0  ;;  %v1178_v27 = vmul.f32 0.1, %v1176_v25 }
0x1596   :  { %v1179_v28 = vsel %vm1177_vm12, %v1176_v25, %v1178_v27 }
0x1597   :  { %v1180_v29 = vpack.c.bf16 %v1179_v28, %v1179_v28  ;;  %v1170_v30 = vpop.f32.mrf.mxu0 }
0x1599   :  { %1344 = vmatmul.msk.bf16.vlgmr.msra.gmra.mxu0 %vm66_vm0, %v1180_v29  ;;  %vm1244_vm0 = vcmask 72704  }
0x1616   :  { %v1205_v34 = vpop.f32.mrf.mxu0 }
0x1617   :  { %v1206_v36 = vadd.f32 %v1369_v33, %v1205_v34 }
0x1619   :  { %vm1209_vm13 = vcmp.gt.f32.partialorder %v1206_v36, 0.0  ;;  %v1210_v37 = vmul.f32 0.1, %v1206_v36 }
0x161b   :  { %v1211_v41 = vsel %vm1209_vm13, %v1206_v36, %v1210_v37 }
0x161c   :  { %v1212_v42 = vpack.c.bf16 %v1211_v41, %v1211_v41 }
0x161e   :  { %v1207_v43 = vpop.f32.mrf.mxu0  ;;  %1345 = vmatmul.msk.bf16.vlgmr.msra.gmra.mxu1 %vm1218_vm14, %v1212_v42 }
0x169b   :  { %v1235_v47 = vpop.f32.mrf.mxu1 }
0x169c   :  { %v1236_v38 = vadd.f32 %v1370_v45, %v1235_v47 }
0x169e   :  { %1240 = vrot.lane.b32.xlu1 %v1236_v38, %s1505_s7 }
0x16a3   :  { %v1237_v49 = vpop.f32.mrf.mxu1 }
0x1710   :  { %v1241_v50 = vpop.permute.xlu1 %1240 }
0x1711   :  { %v1243_v55 = vsel %vm1218_vm14, %v1211_v41, %v1241_v50 }
0x1712   :  { %v1245_v26 = vsel %vm1244_vm0, %v1243_v55, 0.0 }
0x1713   :  { %1246 = vst [vmem:[%s2019_s12] sm:$0xff] %v1245_v26 }

</bundles_post_ra>
